<compile_context>
chip_gen: v7x
topology: tpu7x:2x2x1
jax: 0.10.0
libtpu: 0.0.40
codegen_flags: <defaults>
</compile_context>

<pallas_src>
import numpy as np
import jax
import jax.numpy as jnp
from jax.experimental import pallas as pl
from jax.experimental.pallas import tpu as pltpu

# ----------------------------- scaled-down config -----------------------------
SAMPLE_RATE = 2000
N_FFT = 64
HOP = 32
N_MELS = 32
F_MIN = 0.0
F_MAX = 1000.0
N_FREQ = N_FFT // 2 + 1            # 33

BS = 2
TIME = 256
T_FRAMES = TIME // HOP + 1         # 9 (center-padded STFT)
NUM_CLASSES = 8
BACKBONE_OUT = 64                  # timm "num_features" stand-in
GEM_EPS = 1e-6
AMIN = 1e-10                       # AmplitudeToDB amin (ref=1.0, top_db=None)

# conv3x3 / stride 2 / pad 1 output spatial dims (H=T_FRAMES, W=N_MELS)
HO = (T_FRAMES + 2 - 3) // 2 + 1   # 5
WO = (N_MELS + 2 - 3) // 2 + 1     # 16

RSEL_BLK = 16                      # B*HO = 10 padded to a sublane multiple of 8
FROWS = BS * T_FRAMES              # 18 frame rows, row = b*T_FRAMES + t
FEATW = WO * BACKBONE_OUT          # 1024 lanes: col = oj*C + c


# =============================== fused Pallas kernel ===============================
def bird_fused_kernel(gem_p_ref, y_ref, frames_ref, dftw_ref, melfb_ref,
                      rsel_ref, mslab_ref, poolp_ref, head_ref, out_ref):
    """Entire BirdClassifier eval forward for the full batch in one grid step."""
    B = BS

    # ---- mel spectrogram (all B*T frame rows at once, 128-lane dense) --------------
    # dftw = diag(hann) @ [cos | sin], zero-padded to 128 lanes (host-precomputed;
    # only |STFT|^2 = re^2 + im^2 is consumed downstream, so the sin sign is irrelevant).
    spec = jnp.dot(frames_ref[...], dftw_ref[...],
                   preferred_element_type=jnp.float32)              # (18, 128)
    # power -> mel in one matmul: melfb = [fb; fb; 0] so spec^2 @ melfb = (re^2+im^2) @ fb
    mel = jnp.dot(spec * spec, melfb_ref[...],
                  preferred_element_type=jnp.float32)               # (18, 32)
    # AmplitudeToDB(power): 10*log10(clamp(x, amin)); top_db=None, ref=1.0
    db = 10.0 * jnp.log10(jnp.maximum(mel, AMIN))
    xn = jnp.abs((db + 80.0) / 80.0)
    img = xn * xn                                                   # (18, 32), row = b*T + t

    # ---- backbone stand-in: Conv3x3/s2/p1 + bias + ReLU, all on the MXU -------------
    # rsel_stack holds three (16, 18) 0/1 row-selection blocks (rows b*HO+oi, 8-aligned
    # block offsets); mslab holds the three host-folded (32, 1024) weight matrices
    # M_di[m, oj*C+c] = sum_dj csel[m, dj*WO+oj] * conv_w[di*3+dj, c] plus a tiled
    # conv-bias row at offset 96.
    a_stack = jnp.dot(rsel_ref[...], img,
                      preferred_element_type=jnp.float32)           # (48, 32)
    feat = jnp.dot(a_stack[0:RSEL_BLK, :],
                   mslab_ref[pl.ds(0, N_MELS), :],
                   preferred_element_type=jnp.float32)              # (16, 1024)
    for di in range(1, 3):
        feat = feat + jnp.dot(a_stack[di * RSEL_BLK:(di + 1) * RSEL_BLK, :],
                              mslab_ref[pl.ds(di * N_MELS, N_MELS), :],
                              preferred_element_type=jnp.float32)
    bias_row = mslab_ref[pl.ds(3 * N_MELS, 1), :]                   # (1, 1024) tiled conv_b
    feat = jnp.maximum(feat + bias_row, 0.0)                        # ReLU; rows 10:16 are junk

    # ---- GeM pooling: avg_pool(clamp(x, eps)^p over full spatial)^(1/p) ------------
    p = gem_p_ref[0]
    powp = jnp.exp(p * jnp.log(jnp.maximum(feat, GEM_EPS)))         # (16, 1024) clamp^p
    pooled_wo = jnp.dot(powp, poolp_ref[...],
                        preferred_element_type=jnp.float32)         # (16, 64): sum over oj
    # per-batch reduction over the HO rows (and drop the junk rows) via a tiny 0/1
    # matrix built from iota; the 1/(HO*WO) mean divisor is folded into it.
    r_idx = jax.lax.broadcasted_iota(jnp.int32, (B, RSEL_BLK), 1)
    b_idx = jax.lax.broadcasted_iota(jnp.int32, (B, RSEL_BLK), 0)
    rowp = jnp.where((r_idx >= b_idx * HO) & (r_idx < (b_idx + 1) * HO),
                     1.0 / float(HO * WO), 0.0)                     # (B, 16)
    pooled = jnp.dot(rowp, pooled_wo,
                     preferred_element_type=jnp.float32)            # (B, 64) spatial mean
    pooled = jnp.exp(jnp.log(pooled) / p)                           # ^(1/p)

    # ---- head1 + softmax + BCE-with-logits -----------------------------------------
    head_w = head_ref[pl.ds(0, BACKBONE_OUT), :]                    # (64, NC)
    head_b = head_ref[pl.ds(BACKBONE_OUT, 1), :]                    # (1, NC)
    logit = jnp.dot(pooled, head_w,
                    preferred_element_type=jnp.float32) + head_b    # (B, NC)
    m = jnp.max(logit, axis=-1, keepdims=True)
    e = jnp.exp(logit - m)
    soft = e / jnp.sum(e, axis=-1, keepdims=True)

    # one-hot target from SMEM int labels
    iota_c = jax.lax.broadcasted_iota(jnp.int32, (B, NUM_CLASSES), 1)
    iota_b = jax.lax.broadcasted_iota(jnp.int32, (B, NUM_CLASSES), 0)
    y1h = jnp.zeros((B, NUM_CLASSES), jnp.float32)
    for b in range(B):                                              # B=2, static unroll
        y1h = jnp.where((iota_b == b) & (iota_c == y_ref[b]), 1.0, y1h)
    bce = jnp.maximum(logit, 0.0) - logit * y1h + jnp.log1p(jnp.exp(-jnp.abs(logit)))

    # packed output: leading-dim-aligned stores (no lane-offset concatenate)
    out_ref[0, :, :] = logit
    out_ref[1, :, :] = soft
    out_ref[2, :, :] = bce


# ================================ pallas_call wrapper ==============================
def bird_classifier_forward(params, x_wav, y):
    """Inference forward (is_test=True, model.eval()): no augmentation / mixup / dropout."""
    B = x_wav.shape[0]
    pad = N_FFT // 2
    wav_pad = jnp.pad(x_wav, ((0, 0), (pad, pad)), mode="reflect")  # torch.stft(center=True)
    # hoisted framing: one contiguous (B*T, n_fft) slab, row = b*T_FRAMES + t
    idx = np.arange(T_FRAMES)[:, None] * HOP + np.arange(N_FFT)[None, :]
    frames = wav_pad[:, idx].reshape(B * T_FRAMES, N_FFT)
    y_i32 = y.astype(jnp.int32)

    vmem = pl.BlockSpec(memory_space=pltpu.MemorySpace.VMEM)
    smem = pl.BlockSpec(memory_space=pltpu.MemorySpace.SMEM)
    out = pl.pallas_call(
        bird_fused_kernel,
        out_shape=jax.ShapeDtypeStruct((3, B, NUM_CLASSES), jnp.float32),
        in_specs=[
            smem,                                                   # gem p (scalar param)
            smem,                                                   # labels (B,) int32
            vmem,                                                   # frames (B*T, n_fft)
            vmem,                                                   # windowed [cos|sin] pad 128
            vmem,                                                   # stacked mel fb pad 128 rows
            vmem,                                                   # rsel stack (48, 18)
            vmem,                                                   # M slab (3x32 rows + bias row)
            vmem,                                                   # Wo-pool matrix (1024, 64)
            vmem,                                                   # head [w; b] slab
        ],
        out_specs=vmem,
    )(params["gem_p"], y_i32, frames, params["dftw"], params["melfb"],
      params["rsel"], params["mslab"], params["poolp"], params["head_slab"])

    logit = out[0]
    soft = out[1]
    loss = jnp.sum(out[2])                                          # BCE(reduction='none').sum()
    return {"loss": loss, "logit": logit, "logit_soft": soft, "target": y}


# ================================ host precompute ==================================
def make_mel_filterbank(n_freq, n_mels, sr, f_min, f_max):
    """torchaudio-style HTK triangular mel filterbank (norm=None), shape (n_freq, n_mels)."""
    def hz_to_mel(f):
        return 2595.0 * np.log10(1.0 + f / 700.0)

    def mel_to_hz(m):
        return 700.0 * (10.0 ** (m / 2595.0) - 1.0)

    all_freqs = np.linspace(0.0, sr / 2.0, n_freq)
    m_pts = np.linspace(hz_to_mel(f_min), hz_to_mel(f_max), n_mels + 2)
    f_pts = mel_to_hz(m_pts)
    f_diff = f_pts[1:] - f_pts[:-1]
    slopes = f_pts[None, :] - all_freqs[:, None]
    down = -slopes[:, :-2] / f_diff[:-1]
    up = slopes[:, 2:] / f_diff[1:]
    fb = np.maximum(0.0, np.minimum(down, up))
    return fb.astype(np.float32)


def init_params(key):
    k1, k2, k3, k4 = jax.random.split(key, 4)

    # raw model parameters (deterministic from the key)
    conv_w = np.asarray(0.1 * jax.random.normal(k1, (9, BACKBONE_OUT), jnp.float32))
    conv_b = np.asarray(0.01 * jax.random.normal(k2, (BACKBONE_OUT,), jnp.float32))
    head_w = np.asarray(0.05 * jax.random.normal(k3, (BACKBONE_OUT, NUM_CLASSES), jnp.float32))
    head_b = np.asarray(0.01 * jax.random.normal(k4, (NUM_CLASSES,), jnp.float32))

    # Hann (periodic) window folded into the DFT basis, zero-padded to 128 lanes
    n = np.arange(N_FFT)
    window = 0.5 * (1.0 - np.cos(2.0 * np.pi * n / N_FFT))
    k = np.arange(N_FREQ)
    ang = 2.0 * np.pi * n[:, None] * k[None, :] / N_FFT
    dftw = np.zeros((N_FFT, 128), np.float32)
    dftw[:, :N_FREQ] = window[:, None] * np.cos(ang)
    dftw[:, N_FREQ:2 * N_FREQ] = window[:, None] * np.sin(ang)

    # stacked mel filterbank [fb; fb], zero-padded to 128 rows (matches padded spec)
    fb = make_mel_filterbank(N_FREQ, N_MELS, SAMPLE_RATE, F_MIN, F_MAX)  # (33, 32)
    melfb = np.zeros((128, N_MELS), np.float32)
    melfb[:N_FREQ] = fb
    melfb[N_FREQ:2 * N_FREQ] = fb

    # Conv3x3/s2/p1 row-selection: three 0/1 blocks, each padded to 16 rows so every
    # in-kernel block slice is sublane-aligned. Cols index img rows (b*T + t).
    rsel = np.zeros((3 * RSEL_BLK, FROWS), np.float32)              # (48, 18)
    for di in range(3):
        for b in range(BS):
            for oi in range(HO):
                r = 2 * oi + di - 1
                if 0 <= r < T_FRAMES:
                    rsel[di * RSEL_BLK + b * HO + oi, b * T_FRAMES + r] = 1.0

    # conv_w folded with the column-selection into M_di[m, oj*C + c]; conv bias tiled
    # over oj appended as one extra row of the same slab.
    mslab = np.zeros((104, FEATW), np.float32)                      # 3*32 M rows + bias row, padded
    for di in range(3):
        for dj in range(3):
            for oj in range(WO):
                cc = 2 * oj + dj - 1
                if 0 <= cc < N_MELS:
                    mslab[di * N_MELS + cc, oj * BACKBONE_OUT:(oj + 1) * BACKBONE_OUT] += \
                        conv_w[di * 3 + dj]
    mslab[3 * N_MELS, :] = np.tile(conv_b, WO)                      # bias_row[oj*C + c] = conv_b[c]

    # GeM Wo-pooling matrix: poolP[oj*C + c, c'] = 1 iff c == c'
    poolp = np.tile(np.eye(BACKBONE_OUT, dtype=np.float32), (WO, 1))  # (1024, 64)

    # head weights + bias packed into one slab (row 64 = bias, 8-aligned)
    head_slab = np.zeros((72, NUM_CLASSES), np.float32)
    head_slab[:BACKBONE_OUT] = head_w
    head_slab[BACKBONE_OUT] = head_b

    return {
        "gem_p": jnp.asarray([3.0], dtype=jnp.float32),             # GeM Parameter p
        "dftw": jnp.asarray(dftw),
        "melfb": jnp.asarray(melfb),
        "rsel": jnp.asarray(rsel),
        "mslab": jnp.asarray(mslab),
        "poolp": jnp.asarray(poolp),
        "head_slab": jnp.asarray(head_slab),
    }


if __name__ == "__main__":
    key = jax.random.PRNGKey(0)
    pkey, xkey = jax.random.split(key)
    params = init_params(pkey)

    x_wav = 0.1 * jax.random.normal(xkey, (BS, TIME), jnp.float32)
    y = jnp.array([1, 3], dtype=jnp.int32)

    out = bird_classifier_forward(params, x_wav, y)
    out = jax.block_until_ready(out)

    assert out["logit"].shape == (BS, NUM_CLASSES)
    assert out["logit_soft"].shape == (BS, NUM_CLASSES)
    assert bool(jnp.isfinite(out["loss"])) and bool(jnp.all(jnp.isfinite(out["logit"])))
    print("KERNEL_OK")
</pallas_src>

<mosaic_0001>
module attributes {stable_mosaic.version = 11 : i64} {
  func.func @bird_fused_kernel(%arg0: memref<1xf32, #tpu.memory_space<smem>>, %arg1: memref<2xi32, #tpu.memory_space<smem>>, %arg2: memref<18x64xf32, #tpu.memory_space<vmem>>, %arg3: memref<64x128xf32, #tpu.memory_space<vmem>>, %arg4: memref<128x32xf32, #tpu.memory_space<vmem>>, %arg5: memref<48x18xf32, #tpu.memory_space<vmem>>, %arg6: memref<104x1024xf32, #tpu.memory_space<vmem>>, %arg7: memref<1024x64xf32, #tpu.memory_space<vmem>>, %arg8: memref<72x8xf32, #tpu.memory_space<vmem>>, %arg9: memref<3x2x8xf32, #tpu.memory_space<vmem>>) attributes {dimension_semantics = [], scalar_prefetch = 0 : i64, scratch_operands = 0 : i64, tpu.core_type = #tpu.core_type<tc>} {
    %c0 = arith.constant 0 : index
    %c0_0 = arith.constant 0 : index
    %0 = vector.load %arg2[%c0, %c0_0] : memref<18x64xf32, #tpu.memory_space<vmem>>, vector<18x64xf32>
    %c0_1 = arith.constant 0 : index
    %c0_2 = arith.constant 0 : index
    %1 = vector.load %arg3[%c0_1, %c0_2] : memref<64x128xf32, #tpu.memory_space<vmem>>, vector<64x128xf32>
    %cst = arith.constant dense<0.000000e+00> : vector<18x128xf32>
    %2 = tpu.matmul %0, %1, %cst {dimension_numbers = #tpu.dot_dimension_numbers<[1], [0], [0], [1], [0, 0, 1, 1], [], []>} : vector<18x64xf32>, vector<64x128xf32>, vector<18x128xf32> -> vector<18x128xf32>
    %3 = arith.mulf %2, %2 : vector<18x128xf32>
    %c0_3 = arith.constant 0 : index
    %c0_4 = arith.constant 0 : index
    %4 = vector.load %arg4[%c0_3, %c0_4] : memref<128x32xf32, #tpu.memory_space<vmem>>, vector<128x32xf32>
    %cst_5 = arith.constant dense<0.000000e+00> : vector<18x32xf32>
    %5 = tpu.matmul %3, %4, %cst_5 {dimension_numbers = #tpu.dot_dimension_numbers<[1], [0], [0], [1], [0, 0, 1, 1], [], []>} : vector<18x128xf32>, vector<128x32xf32>, vector<18x32xf32> -> vector<18x32xf32>
    %cst_6 = arith.constant 1.000000e-10 : f32
    %6 = vector.broadcast %cst_6 : f32 to vector<18x32xf32>
    %7 = arith.maximumf %5, %6 : vector<18x32xf32>
    %8 = math.log %7 : vector<18x32xf32>
    %cst_7 = arith.constant 0.434294492 : f32
    %9 = vector.broadcast %cst_7 : f32 to vector<18x32xf32>
    %10 = arith.mulf %8, %9 : vector<18x32xf32>
    %cst_8 = arith.constant 1.000000e+01 : f32
    %11 = vector.broadcast %cst_8 : f32 to vector<18x32xf32>
    %12 = arith.mulf %11, %10 : vector<18x32xf32>
    %cst_9 = arith.constant 8.000000e+01 : f32
    %13 = vector.broadcast %cst_9 : f32 to vector<18x32xf32>
    %14 = arith.addf %12, %13 : vector<18x32xf32>
    %cst_10 = arith.constant 8.000000e+01 : f32
    %15 = vector.broadcast %cst_10 : f32 to vector<18x32xf32>
    %16 = arith.divf %14, %15 : vector<18x32xf32>
    %17 = math.absf %16 : vector<18x32xf32>
    %18 = arith.mulf %17, %17 : vector<18x32xf32>
    %c0_11 = arith.constant 0 : index
    %c0_12 = arith.constant 0 : index
    %19 = vector.load %arg5[%c0_11, %c0_12] : memref<48x18xf32, #tpu.memory_space<vmem>>, vector<48x18xf32>
    %cst_13 = arith.constant dense<0.000000e+00> : vector<48x32xf32>
    %20 = tpu.matmul %19, %18, %cst_13 {dimension_numbers = #tpu.dot_dimension_numbers<[1], [0], [0], [1], [0, 0, 1, 1], [], []>} : vector<48x18xf32>, vector<18x32xf32>, vector<48x32xf32> -> vector<48x32xf32>
    %21 = vector.extract_strided_slice %20 {offsets = [0, 0], sizes = [16, 32], strides = [1, 1]} : vector<48x32xf32> to vector<16x32xf32>
    %c0_14 = arith.constant 0 : index
    %c0_15 = arith.constant 0 : index
    %22 = vector.load %arg6[%c0_14, %c0_15] : memref<104x1024xf32, #tpu.memory_space<vmem>>, vector<32x1024xf32>
    %cst_16 = arith.constant dense<0.000000e+00> : vector<16x1024xf32>
    %23 = tpu.matmul %21, %22, %cst_16 {dimension_numbers = #tpu.dot_dimension_numbers<[1], [0], [0], [1], [0, 0, 1, 1], [], []>} : vector<16x32xf32>, vector<32x1024xf32>, vector<16x1024xf32> -> vector<16x1024xf32>
    %24 = vector.extract_strided_slice %20 {offsets = [16, 0], sizes = [16, 32], strides = [1, 1]} : vector<48x32xf32> to vector<16x32xf32>
    %c32 = arith.constant 32 : index
    %c0_17 = arith.constant 0 : index
    %25 = vector.load %arg6[%c32, %c0_17] : memref<104x1024xf32, #tpu.memory_space<vmem>>, vector<32x1024xf32>
    %cst_18 = arith.constant dense<0.000000e+00> : vector<16x1024xf32>
    %26 = tpu.matmul %24, %25, %cst_18 {dimension_numbers = #tpu.dot_dimension_numbers<[1], [0], [0], [1], [0, 0, 1, 1], [], []>} : vector<16x32xf32>, vector<32x1024xf32>, vector<16x1024xf32> -> vector<16x1024xf32>
    %27 = arith.addf %23, %26 : vector<16x1024xf32>
    %28 = vector.extract_strided_slice %20 {offsets = [32, 0], sizes = [16, 32], strides = [1, 1]} : vector<48x32xf32> to vector<16x32xf32>
    %c64 = arith.constant 64 : index
    %c0_19 = arith.constant 0 : index
    %29 = vector.load %arg6[%c64, %c0_19] : memref<104x1024xf32, #tpu.memory_space<vmem>>, vector<32x1024xf32>
    %cst_20 = arith.constant dense<0.000000e+00> : vector<16x1024xf32>
    %30 = tpu.matmul %28, %29, %cst_20 {dimension_numbers = #tpu.dot_dimension_numbers<[1], [0], [0], [1], [0, 0, 1, 1], [], []>} : vector<16x32xf32>, vector<32x1024xf32>, vector<16x1024xf32> -> vector<16x1024xf32>
    %31 = arith.addf %27, %30 : vector<16x1024xf32>
    %c96 = arith.constant 96 : index
    %c0_21 = arith.constant 0 : index
    %32 = vector.load %arg6[%c96, %c0_21] : memref<104x1024xf32, #tpu.memory_space<vmem>>, vector<1x1024xf32>
    %33 = vector.broadcast %32 : vector<1x1024xf32> to vector<16x1024xf32>
    %34 = arith.addf %31, %33 : vector<16x1024xf32>
    %cst_22 = arith.constant 0.000000e+00 : f32
    %35 = vector.broadcast %cst_22 : f32 to vector<16x1024xf32>
    %36 = arith.maximumf %34, %35 : vector<16x1024xf32>
    %c0_23 = arith.constant 0 : index
    %37 = memref.load %arg0[%c0_23] : memref<1xf32, #tpu.memory_space<smem>>
    %cst_24 = arith.constant 9.99999997E-7 : f32
    %38 = vector.broadcast %cst_24 : f32 to vector<16x1024xf32>
    %39 = arith.maximumf %36, %38 : vector<16x1024xf32>
    %40 = math.log %39 : vector<16x1024xf32>
    %41 = vector.broadcast %37 : f32 to vector<16x1024xf32>
    %42 = arith.mulf %41, %40 : vector<16x1024xf32>
    %43 = math.exp %42 : vector<16x1024xf32>
    %c0_25 = arith.constant 0 : index
    %c0_26 = arith.constant 0 : index
    %44 = vector.load %arg7[%c0_25, %c0_26] : memref<1024x64xf32, #tpu.memory_space<vmem>>, vector<1024x64xf32>
    %cst_27 = arith.constant dense<0.000000e+00> : vector<16x64xf32>
    %45 = tpu.matmul %43, %44, %cst_27 {dimension_numbers = #tpu.dot_dimension_numbers<[1], [0], [0], [1], [0, 0, 1, 1], [], []>} : vector<16x1024xf32>, vector<1024x64xf32>, vector<16x64xf32> -> vector<16x64xf32>
    %46 = tpu.iota {dimensions = array<i32: 1>} : vector<2x16xi32>
    %47 = tpu.iota {dimensions = array<i32: 0>} : vector<2x16xi32>
    %c5_i32 = arith.constant 5 : i32
    %48 = vector.broadcast %c5_i32 : i32 to vector<2x16xi32>
    %49 = arith.muli %47, %48 : vector<2x16xi32>
    %50 = arith.cmpi sge, %46, %49 : vector<2x16xi32>
    %c1_i32 = arith.constant 1 : i32
    %51 = vector.broadcast %c1_i32 : i32 to vector<2x16xi32>
    %52 = arith.addi %47, %51 : vector<2x16xi32>
    %c5_i32_28 = arith.constant 5 : i32
    %53 = vector.broadcast %c5_i32_28 : i32 to vector<2x16xi32>
    %54 = arith.muli %52, %53 : vector<2x16xi32>
    %55 = arith.cmpi slt, %46, %54 : vector<2x16xi32>
    %56 = arith.andi %50, %55 : vector<2x16xi1>
    %cst_29 = arith.constant 1.250000e-02 : f32
    %cst_30 = arith.constant 0.000000e+00 : f32
    %57 = vector.broadcast %cst_29 : f32 to vector<2x16xf32>
    %58 = vector.broadcast %cst_30 : f32 to vector<2x16xf32>
    %59 = arith.select %56, %57, %58 : vector<2x16xi1>, vector<2x16xf32>
    %cst_31 = arith.constant dense<0.000000e+00> : vector<2x64xf32>
    %60 = tpu.matmul %59, %45, %cst_31 {dimension_numbers = #tpu.dot_dimension_numbers<[1], [0], [0], [1], [0, 0, 1, 1], [], []>} : vector<2x16xf32>, vector<16x64xf32>, vector<2x64xf32> -> vector<2x64xf32>
    %61 = math.log %60 : vector<2x64xf32>
    %62 = vector.broadcast %37 : f32 to vector<2x64xf32>
    %63 = arith.divf %61, %62 : vector<2x64xf32>
    %64 = math.exp %63 : vector<2x64xf32>
    %c0_32 = arith.constant 0 : index
    %c0_33 = arith.constant 0 : index
    %65 = vector.load %arg8[%c0_32, %c0_33] : memref<72x8xf32, #tpu.memory_space<vmem>>, vector<64x8xf32>
    %c64_34 = arith.constant 64 : index
    %c0_35 = arith.constant 0 : index
    %66 = vector.load %arg8[%c64_34, %c0_35] : memref<72x8xf32, #tpu.memory_space<vmem>>, vector<1x8xf32>
    %cst_36 = arith.constant dense<0.000000e+00> : vector<2x8xf32>
    %67 = tpu.matmul %64, %65, %cst_36 {dimension_numbers = #tpu.dot_dimension_numbers<[1], [0], [0], [1], [0, 0, 1, 1], [], []>} : vector<2x64xf32>, vector<64x8xf32>, vector<2x8xf32> -> vector<2x8xf32>
    %68 = vector.broadcast %66 : vector<1x8xf32> to vector<2x8xf32>
    %69 = arith.addf %67, %68 : vector<2x8xf32>
    %cst_37 = arith.constant dense<0xFF800000> : vector<2xf32>
    %70 = vector.multi_reduction <maximumf>, %69, %cst_37 [1] : vector<2x8xf32> to vector<2xf32>
    %71 = vector.shape_cast %70 : vector<2xf32> to vector<2x1xf32>
    %72 = vector.broadcast %71 : vector<2x1xf32> to vector<2x8xf32>
    %73 = arith.subf %69, %72 : vector<2x8xf32>
    %74 = math.exp %73 : vector<2x8xf32>
    %cst_38 = arith.constant dense<0.000000e+00> : vector<2xf32>
    %75 = vector.multi_reduction <add>, %74, %cst_38 [1] : vector<2x8xf32> to vector<2xf32>
    %76 = vector.shape_cast %75 : vector<2xf32> to vector<2x1xf32>
    %77 = vector.broadcast %76 : vector<2x1xf32> to vector<2x8xf32>
    %78 = arith.divf %74, %77 : vector<2x8xf32>
    %79 = tpu.iota {dimensions = array<i32: 1>} : vector<2x8xi32>
    %80 = tpu.iota {dimensions = array<i32: 0>} : vector<2x8xi32>
    %cst_39 = arith.constant 0.000000e+00 : f32
    %81 = vector.broadcast %cst_39 : f32 to vector<2x8xf32>
    %c0_i32 = arith.constant 0 : i32
    %82 = vector.broadcast %c0_i32 : i32 to vector<2x8xi32>
    %83 = arith.cmpi eq, %80, %82 : vector<2x8xi32>
    %c0_40 = arith.constant 0 : index
    %84 = memref.load %arg1[%c0_40] : memref<2xi32, #tpu.memory_space<smem>>
    %85 = vector.broadcast %84 : i32 to vector<2x8xi32>
    %86 = arith.cmpi eq, %79, %85 : vector<2x8xi32>
    %87 = arith.andi %83, %86 : vector<2x8xi1>
    %cst_41 = arith.constant 1.000000e+00 : f32
    %88 = vector.broadcast %cst_41 : f32 to vector<2x8xf32>
    %89 = arith.select %87, %88, %81 : vector<2x8xi1>, vector<2x8xf32>
    %c1_i32_42 = arith.constant 1 : i32
    %90 = vector.broadcast %c1_i32_42 : i32 to vector<2x8xi32>
    %91 = arith.cmpi eq, %80, %90 : vector<2x8xi32>
    %c1 = arith.constant 1 : index
    %92 = memref.load %arg1[%c1] : memref<2xi32, #tpu.memory_space<smem>>
    %93 = vector.broadcast %92 : i32 to vector<2x8xi32>
    %94 = arith.cmpi eq, %79, %93 : vector<2x8xi32>
    %95 = arith.andi %91, %94 : vector<2x8xi1>
    %cst_43 = arith.constant 1.000000e+00 : f32
    %96 = vector.broadcast %cst_43 : f32 to vector<2x8xf32>
    %97 = arith.select %95, %96, %89 : vector<2x8xi1>, vector<2x8xf32>
    %cst_44 = arith.constant 0.000000e+00 : f32
    %98 = vector.broadcast %cst_44 : f32 to vector<2x8xf32>
    %99 = arith.maximumf %69, %98 : vector<2x8xf32>
    %100 = arith.mulf %69, %97 : vector<2x8xf32>
    %101 = arith.subf %99, %100 : vector<2x8xf32>
    %102 = math.absf %69 : vector<2x8xf32>
    %cst_45 = arith.constant 0.000000e+00 : f32
    %103 = vector.broadcast %cst_45 : f32 to vector<2x8xf32>
    %104 = arith.subf %103, %102 : vector<2x8xf32>
    %105 = math.exp %104 : vector<2x8xf32>
    %106 = math.log1p %105 : vector<2x8xf32>
    %107 = arith.addf %101, %106 : vector<2x8xf32>
    %c0_46 = arith.constant 0 : index
    %c0_47 = arith.constant 0 : index
    %c0_48 = arith.constant 0 : index
    %108 = vector.load %arg9[%c0_46, %c0_47, %c0_48] : memref<3x2x8xf32, #tpu.memory_space<vmem>>, vector<1x2x8xf32>
    %109 = vector.shape_cast %108 : vector<1x2x8xf32> to vector<2x8xf32>
    %110 = vector.shape_cast %69 : vector<2x8xf32> to vector<1x2x8xf32>
    tpu.vector_store %arg9[%c0_46, %c0_47, %c0_48], %110 {strides = array<i32>} : memref<3x2x8xf32, #tpu.memory_space<vmem>>, vector<1x2x8xf32>,
    %c1_49 = arith.constant 1 : index
    %c0_50 = arith.constant 0 : index
    %c0_51 = arith.constant 0 : index
    %111 = vector.load %arg9[%c1_49, %c0_50, %c0_51] : memref<3x2x8xf32, #tpu.memory_space<vmem>>, vector<1x2x8xf32>
    %112 = vector.shape_cast %111 : vector<1x2x8xf32> to vector<2x8xf32>
    %113 = vector.shape_cast %78 : vector<2x8xf32> to vector<1x2x8xf32>
    tpu.vector_store %arg9[%c1_49, %c0_50, %c0_51], %113 {strides = array<i32>} : memref<3x2x8xf32, #tpu.memory_space<vmem>>, vector<1x2x8xf32>,
    %c2 = arith.constant 2 : index
    %c0_52 = arith.constant 0 : index
    %c0_53 = arith.constant 0 : index
    %114 = vector.load %arg9[%c2, %c0_52, %c0_53] : memref<3x2x8xf32, #tpu.memory_space<vmem>>, vector<1x2x8xf32>
    %115 = vector.shape_cast %114 : vector<1x2x8xf32> to vector<2x8xf32>
    %116 = vector.shape_cast %107 : vector<2x8xf32> to vector<1x2x8xf32>
    tpu.vector_store %arg9[%c2, %c0_52, %c0_53], %116 {strides = array<i32>} : memref<3x2x8xf32, #tpu.memory_space<vmem>>, vector<1x2x8xf32>,
    return
  }
}

</mosaic_0001>

<bundles_post_ra>
// kernel: tpu_custom_call.1
= control target key start
LH: loop header
LB: loop body
LE: loop exit
PB: predicated region body
PF: predicated region fallthrough
CT: control target
= control target key end

     0   :  { %15 = vsyncpa [#allocation5], 0  ;;  %s4155_s0 = inlined_call_operand.<no memory space> [shape: f32[1], index: 0, kind: input, shape index: {}]   ;;  %s4156_s1 = inlined_call_operand.vmem [shape: s32[2], index: 1, kind: input, shape index: {}]   ;;  %s4157_s2 = inlined_call_operand.vmem [shape: f32[18,64], index: 2, kind: input, shape index: {}]   ;;  %s4158_s3 = inlined_call_operand.vmem [shape: f32[64,128], index: 3, kind: input, shape index: {}]   ;;  %s4159_s4 = inlined_call_operand.vmem [shape: f32[128,32], index: 4, kind: input, shape index: {}]   ;;  %s4160_s5 = inlined_call_operand.vmem [shape: f32[48,18], index: 5, kind: input, shape index: {}]   ;;  %s4161_s6 = inlined_call_operand.vmem [shape: f32[104,1024], index: 6, kind: input, shape index: {}]   ;;  %s4162_s7 = inlined_call_operand.vmem [shape: f32[1024,64], index: 7, kind: input, shape index: {}]   ;;  %s4163_s8 = inlined_call_operand.vmem [shape: f32[72,8], index: 8, kind: input, shape index: {}]   ;;  %s4164_s9 = inlined_call_operand.hbm [shape: f32[3,2,8], index: 9, kind: output, shape index: {}]  }
   0x1   :  { %16 = vsyncpa [#allocation4], 0  ;;  %s25_s11 = sshll.u32 %s4156_s1, 4  ;;  %s26_s11 = int_to_ptr.vmem [resolvable:$true] %s25_s11 }
   0x2   :  { %s3049_s12 = scalar_lea.vmem %s26_s11, 16  ;;  %p3054_p1 = scmp.lt.s32.totalorder %s26_s11, %s26_s11 }
   0x3   :  { %p3050_p0 = scmp.ne.s32.totalorder %s26_s11, %s3049_s12  ;;  %p3055_p2 = scmp.lt.s32.totalorder %s3049_s12, %s3049_s12 }
   0x5   :  { %p3056_p3 = por %p3055_p2, %p3054_p1 }
   0x7   :  { %p3057_p4 = pnand %p3056_p3, %p3050_p0 }
   0x9   :  { %3060 = shalt.err (!%p3057_p4)
}
   0xa   :  { %s3087_s13 = smov [#allocation3]  }
   0xb   :  { %28 = dma.vmem_to_smem %s26_s11, 16, %s3087_s13, [#allocation5]  }
   0xc   :  { %3083 = dma.done.wait [#allocation5], 16  }
   0xd   :  { %3084 = vsyncadd [#allocation5], 4294967280 }
   0xe   :  { %46 = sfence }
   0xf   :  { %v50_v0 = vld [vmem:[%s4158_s3] sm:$0xff]  ;;  %v51_v1 = vld [vmem:[%s4158_s3 + $0x8] sm:$0xff]  ;;  %v52_v2 = vld [vmem:[%s4158_s3 + $0x10] sm:$0xff]  ;;  %v3088_v3 = vmov 0.0|0.0   ;;  %vm3089_vm0 = vmmov 0   ;;  %v3090_v6 = vmov 0.0  }
  0x10   :  { %2647 = vmatprep.subr.bf16.mxu0 %v3088_v3  ;;  %v2648_v4 = vpack.c.bf16 %v51_v1, %v50_v0  ;;  %v53_v5 = vld [vmem:[%s4158_s3 + $0x18] sm:$0xff]  ;;  %2556 = vmatprep.mubr.msk.f32.mxu0 %vm3089_vm0, %v3090_v6  ;;  %v54_v8 = vld [vmem:[%s4158_s3 + $0x20] sm:$0xff]  ;;  %v55_v9 = vld [vmem:[%s4158_s3 + $0x28] sm:$0xff]  ;;  %vm58_vm1 = vcmask 523264   ;;  %vm281_vm2 = vcmask 146432   ;;  %vm300_vm3 = vcmask 1041408  }
  0x11   :  { %2659 = vmatprep.subr.bf16.mxu1 %v3088_v3  ;;  %2597 = vmatprep.mubr.msk.f32.mxu1 %vm3089_vm0, %v3090_v6  ;;  %v2651_v7 = vpack.c.bf16 %v53_v5, %v52_v2  ;;  %v151_v10 = vld [vmem:[%s4159_s4] sm:$0xff]  ;;  %v152_v11 = vld [vmem:[%s4159_s4 + $0x8] sm:$0xff]  ;;  %v153_v12 = vld [vmem:[%s4159_s4 + $0x10] sm:$0xff]  ;;  %v2654_v15 = vpack.c.bf16 %v55_v9, %v54_v8  ;;  %vm463_vm4 = vcmask 261120   ;;  %vm2068_vm8 = vcmask 130048   ;;  %s2247_s25 = sld [smem:[#allocation3]] }
  0x12   :  { %2649 = vmatpush3.bf16.msra.mxu0 %v2648_v4  ;;  %v154_v13 = vld [vmem:[%s4159_s4 + $0x18] sm:$0xff]  ;;  %v2660_v14 = vpack.c.bf16 %v152_v11, %v151_v10  ;;  %v56_v16 = vld [vmem:[%s4158_s3 + $0x30] sm:$0xff]  ;;  %v155_v19 = vld [vmem:[%s4159_s4 + $0x20] sm:$0xff]  ;;  %vm2234_vm9 = vcmask 58368  }
  0x13   :  { %2650 = vmatprep.subr.bf16.mxu0 %v3088_v3  ;;  %v2663_v17 = vpack.c.bf16 %v154_v13, %v153_v12  ;;  %v57_v18 = vld [vmem:[%s4158_s3 + $0x38] sm:$0xff]  ;;  %v156_v20 = vld [vmem:[%s4159_s4 + $0x28] sm:$0xff]  ;;  %v157_v23 = vld [vmem:[%s4159_s4 + $0x30] sm:$0xff] }
  0x14   :  { %2661 = vmatpush3.bf16.msra.mxu1 %v2660_v14  ;;  %v2657_v21 = vpack.c.bf16 %v57_v18, %v56_v16  ;;  %v2666_v22 = vpack.c.bf16 %v156_v20, %v155_v19  ;;  %v158_v24 = vld [vmem:[%s4159_s4 + $0x38] sm:$0xff]  ;;  %v47_v25 = vld [vmem:[%s4157_s2] sm:$0xff]  ;;  %v160_v28 = vld [vmem:[%s4159_s4 + $0x48] sm:$0xff] }
  0x15   :  { %2662 = vmatprep.subr.bf16.mxu1 %v3088_v3  ;;  %v2669_v26 = vpack.c.bf16 %v158_v24, %v157_v23  ;;  %v159_v27 = vld [vmem:[%s4159_s4 + $0x40] sm:$0xff]  ;;  %v48_v29 = vld [vmem:[%s4157_s2 + $0x8] sm:$0xff]  ;;  %v161_v31 = vld [vmem:[%s4159_s4 + $0x50] sm:$0xff] }
  0x16   :  { %2652 = vmatpush3.bf16.msra.mxu0 %v2651_v7  ;;  %v2672_v30 = vpack.c.bf16 %v160_v28, %v159_v27  ;;  %v162_v32 = vld [vmem:[%s4159_s4 + $0x58] sm:$0xff]  ;;  %v49_v33 = vld [vmem:[%s4157_s2 + $0x10] sm:$0x3]  ;;  %v163_v35 = vld [vmem:[%s4159_s4 + $0x60] sm:$0xff] }
  0x17   :  { %2653 = vmatprep.subr.bf16.mxu0 %v3088_v3  ;;  %v2675_v34 = vpack.c.bf16 %v162_v32, %v161_v31  ;;  %v164_v36 = vld [vmem:[%s4159_s4 + $0x68] sm:$0xff]  ;;  %v165_v38 = vld [vmem:[%s4159_s4 + $0x70] sm:$0xff]  ;;  %v166_v39 = vld [vmem:[%s4159_s4 + $0x78] sm:$0xff] }
  0x18   :  { %2664 = vmatpush3.bf16.msra.mxu1 %v2663_v17  ;;  %v2678_v37 = vpack.c.bf16 %v164_v36, %v163_v35  ;;  %v2681_v40 = vpack.c.bf16 %v166_v39, %v165_v38  ;;  %v275_v50 = vld [vmem:[%s4160_s5] sm:$0xff]  ;;  %v438_v51 = vld [vmem:[%s4161_s6 + $0x138] sm:$0xff]  ;;  %v437_v54 = vld [vmem:[%s4161_s6 + $0x130] sm:$0xff] }
  0x19   :  { %2665 = vmatprep.subr.bf16.mxu1 %v3088_v3  ;;  %v446_v52 = vld [vmem:[%s4161_s6 + $0x178] sm:$0xff]  ;;  %v445_v55 = vld [vmem:[%s4161_s6 + $0x170] sm:$0xff]  ;;  %v432_v28 = vld [vmem:[%s4161_s6 + $0x108] sm:$0xff] }
  0x1a   :  { %2655 = vmatpush3.bf16.msra.mxu0 %v2654_v15  ;;  %v2711_v53 = vpack.c.bf16 %v446_v52, %v438_v51  ;;  %v2713_v56 = vpack.c.bf16 %v445_v55, %v437_v54  ;;  %v431_v31 = vld [vmem:[%s4161_s6 + $0x100] sm:$0xff]  ;;  %v277_v36 = vld [vmem:[%s4160_s5 + $0x10] sm:$0xff]  ;;  %v280_v39 = vld [vmem:[%s4160_s5 + $0x28] sm:$0xff] }
  0x1b   :  { %2656 = vmatprep.subr.bf16.mxu0 %v3088_v3  ;;  %v439_v32 = vld [vmem:[%s4161_s6 + $0x140] sm:$0xff]  ;;  %v434_v52 = vld [vmem:[%s4161_s6 + $0x118] sm:$0xff] }
  0x1c   :  { %2667 = vmatpush3.bf16.msra.mxu1 %v2666_v22  ;;  %v2689_v35 = vpack.c.bf16 %v439_v32, %v431_v31  ;;  %v279_v38 = vld [vmem:[%s4160_s5 + $0x20] sm:$0xff]  ;;  %v402_v54 = vld [vmem:[%s4161_s6 + $0x18] sm:$0xff]  ;;  %v460_v31 = vld [vmem:[%s4161_s6 + $0x1e8] sm:$0xff] }
  0x1d   :  { %2668 = vmatprep.subr.bf16.mxu1 %v3088_v3  ;;  %v422_v32 = vld [vmem:[%s4161_s6 + $0xb8] sm:$0xff] }
  0x1e   :  { %2658 = vmatpush3.bf16.msra.mxu0 %v2657_v21 }
  0x20   :  { %2670 = vmatpush3.bf16.msra.mxu1 %v2669_v26 }
  0x21   :  { %2557 = vmatmul.mubr.msk.f32.vlgmr.msra.gmra.mrb[0].mxu0 %vm58_vm1, %v47_v25  ;;  %2671 = vmatprep.subr.bf16.mxu1 %v3088_v3 }
  0x22   :  { %2559 = vmatprep.mubr.msk.f32.mxu0 %vm3089_vm0, %v3090_v6 }
  0x24   :  { %2673 = vmatpush3.bf16.msra.mxu1 %v2672_v30 }
  0x25   :  { %2560 = vmatmul.mubr.msk.f32.gmra.mrb[2].mxu0 %vm58_vm1, %v48_v29  ;;  %2674 = vmatprep.subr.bf16.mxu1 %v3088_v3  ;;  %v440_v29 = vld [vmem:[%s4161_s6 + $0x148] sm:$0xff] }
  0x26   :  { %2562 = vmatprep.mubr.msk.f32.mxu0 %vm3089_vm0, %v3090_v6 }
  0x28   :  { %2676 = vmatpush3.bf16.msra.mxu1 %v2675_v34  ;;  %v276_v34 = vld [vmem:[%s4160_s5 + $0x8] sm:$0xff] }
  0x29   :  { %2563 = vmatmul.mubr.msk.f32.gmra.mrb[4].mxu0 %vm58_vm1, %v49_v33  ;;  %2677 = vmatprep.subr.bf16.mxu1 %v3088_v3  ;;  %v2687_v33 = vpack.c.bf16 %v440_v29, %v432_v28  ;;  %v452_v29 = vld [vmem:[%s4161_s6 + $0x1a8] sm:$0xff] }
  0x2a   :  { %2612 = vmatprep.mubr.msk.f32.mxu0 %vm281_vm2, %v275_v50  ;;  %v461_v50 = vld [vmem:[%s4161_s6 + $0x1f0] sm:$0xff] }
  0x2c   :  { %2679 = vmatpush3.bf16.msra.mxu1 %v2678_v37  ;;  %v278_v37 = vld [vmem:[%s4160_s5 + $0x18] sm:$0xff] }
  0x2d   :  { %2680 = vmatprep.subr.bf16.mxu1 %v3088_v3 }
  0x30   :  { %2682 = vmatpush3.bf16.msra.mxu1 %v2681_v40  ;;  %v448_v40 = vld [vmem:[%s4161_s6 + $0x188] sm:$0xff] }
  0x31   :  { %2712 = vmatprep.subr.bf16.mxu1 %v2711_v53  ;;  %v442_v53 = vld [vmem:[%s4161_s6 + $0x158] sm:$0xff] }
  0x32   :  { %v2695_v55 = vpack.c.bf16 %v442_v53, %v434_v52 }
  0xf4   :  { %v134_v41 = vpop.f32.mrb[0].mxu0 }
  0xf5   :  { %v148_v42 = vmul.f32 %v134_v41, %v134_v41  ;;  %v2558_v43 = vpop.f32.mrb[1].mxu0  ;;  %v456_v41 = vld [vmem:[%s4161_s6 + $0x1c8] sm:$0xff] }
  0xf6   :  { %v2691_v43 = vpack.c.bf16 %v456_v41, %v448_v40  ;;  %v2707_v40 = vpack.c.bf16 %v460_v31, %v452_v29 }
  0xf7   :  { %2598 = vmatmul.mubr.f32.vlgmr.msra.gmra.mrb[0].mxu1 %v148_v42  ;;  %v454_v42 = vld [vmem:[%s4161_s6 + $0x1b8] sm:$0xff] }
  0xf8   :  { %v139_v44 = vpop.f32.mrb[2].mxu0  ;;  %2600 = vmatprep.mubr.msk.f32.mxu1 %vm3089_vm0, %v3090_v6  ;;  %2714 = vmatpush1.bf16.msra.mxu1 %v2713_v56  ;;  %v410_v56 = vld [vmem:[%s4161_s6 + $0x58] sm:$0xff] }
  0xf9   :  { %v149_v45 = vmul.f32 %v139_v44, %v139_v44  ;;  %v2561_v46 = vpop.f32.mrb[3].mxu0  ;;  %v462_v44 = vld [vmem:[%s4161_s6 + $0x1f8] sm:$0xff] }
  0xfa   :  { %v455_v46 = vld [vmem:[%s4161_s6 + $0x1c0] sm:$0xff] }
  0xfb   :  { %2601 = vmatmul.mubr.f32.gmra.mrb[2].mxu1 %v149_v45  ;;  %v447_v45 = vld [vmem:[%s4161_s6 + $0x180] sm:$0xff] }
  0xfc   :  { %v144_v47 = vpop.f32.mrb[4].mxu0  ;;  %2603 = vmatprep.mubr.msk.f32.mxu1 %vm3089_vm0, %v3090_v6 }
  0xfd   :  { %v150_v48 = vmul.f32 %v144_v47, %v144_v47  ;;  %v2564_v49 = vpop.f32.mrb[5].mxu0  ;;  %v2715_v47 = vpack.c.bf16 %v462_v44, %v454_v42  ;;  %v400_v42 = vld [vmem:[%s4161_s6 + $0x8] sm:$0xff]  ;;  %v1095_v44 = vld [vmem:[%s4161_s6 + $0x218] sm:$0xff] }
  0xfe   :  { %v453_v49 = vld [vmem:[%s4161_s6 + $0x1b0] sm:$0xff] }
  0xff   :  { %2604 = vmatmul.mubr.f32.gmra.mrb[4].mxu1 %v150_v48  ;;  %v2693_v48 = vpack.c.bf16 %v455_v46, %v447_v45  ;;  %v2717_v51 = vpack.c.bf16 %v461_v50, %v453_v49  ;;  %2716 = vmatprep.subr.bf16.mxu1 %v2715_v47  ;;  %v1103_v45 = vld [vmem:[%s4161_s6 + $0x258] sm:$0xff]  ;;  %v407_v49 = vld [vmem:[%s4161_s6 + $0x40] sm:$0xff]  ;;  %v1094_v50 = vld [vmem:[%s4161_s6 + $0x210] sm:$0xff] }
 0x100   :  { %765 = vmatprep.mubr.f32.mxu1 %v3090_v6  ;;  %v2759_v53 = vpack.c.bf16 %v1103_v45, %v1095_v44  ;;  %v1116_v44 = vld [vmem:[%s4161_s6 + $0x2c0] sm:$0xff]  ;;  %v1097_v45 = vld [vmem:[%s4161_s6 + $0x228] sm:$0xff] }
 0x101   :  { %2718 = vmatpush1.bf16.msra.mxu1 %v2717_v51  ;;  %v1102_v51 = vld [vmem:[%s4161_s6 + $0x250] sm:$0xff] }
 0x1ca   :  { %v233_v57 = vpop.f32.mrb[0].mxu1 }
 0x1cb   :  { %v247_v58 = vmax.f32 %v233_v57, 1e-10  ;;  %v2599_v59 = vpop.f32.mrb[1].mxu1  ;;  %v2727_v57 = vpack.c.bf16 %v410_v56, %v402_v54  ;;  %v416_v54 = vld [vmem:[%s4161_s6 + $0x88] sm:$0xff]  ;;  %v1111_v56 = vld [vmem:[%s4161_s6 + $0x298] sm:$0xff] }
 0x1cd   :  { %2965 = vlog2.f32 %v247_v58  ;;  %2728 = vmatprep.subr.bf16.mxu1 %v2727_v57  ;;  %v433_v58 = vld [vmem:[%s4161_s6 + $0x110] sm:$0xff]  ;;  %v1119_v57 = vld [vmem:[%s4161_s6 + $0x2d8] sm:$0xff] }
 0x1ce   :  { %v238_v60 = vpop.f32.mrb[2].mxu1 }
 0x1cf   :  { %v248_v61 = vmax.f32 %v238_v60, 1e-10  ;;  %v2602_v62 = vpop.f32.mrb[3].mxu1  ;;  %v441_v60 = vld [vmem:[%s4161_s6 + $0x150] sm:$0xff] }
 0x1d0   :  { %v409_v62 = vld [vmem:[%s4161_s6 + $0x50] sm:$0xff] }
 0x1d1   :  { %2967 = vlog2.f32 %v248_v61  ;;  %v401_v61 = vld [vmem:[%s4161_s6 + $0x10] sm:$0xff] }
 0x1d2   :  { %v243_v63 = vpop.f32.mrb[4].mxu1 }
 0x1d3   :  { %v249_v0 = vmax.f32 %v243_v63, 1e-10  ;;  %v2605_v1 = vpop.f32.mrb[5].mxu1 }
 0x1d4   :  { %v458_v1 = vld [vmem:[%s4161_s6 + $0x1d8] sm:$0xff] }
 0x1d5   :  { %2969 = vlog2.f32 %v249_v0  ;;  %v450_v0 = vld [vmem:[%s4161_s6 + $0x198] sm:$0xff] }
 0x1d7   :  { %v2966_v2 = vpop.eup %2965 }
 0x1d8   :  { %v251_v4 = vmul.f32 0.6931472, %v2966_v2  ;;  %v418_v2 = vld [vmem:[%s4161_s6 + $0x98] sm:$0xff] }
 0x1da   :  { %v256_v5 = vmul.f32 0.4342945, %v251_v4  ;;  %v426_v4 = vld [vmem:[%s4161_s6 + $0xd8] sm:$0xff] }
 0x1db   :  { %v2968_v7 = vpop.eup %2967 }
 0x1dc   :  { %v259_v8 = vmul.f32 10.0, %v256_v5  ;;  %v253_v9 = vmul.f32 0.6931472, %v2968_v7  ;;  %v2697_v5 = vpack.c.bf16 %v441_v60, %v433_v58  ;;  %v2729_v7 = vpack.c.bf16 %v409_v62, %v401_v61  ;;  %v415_v61 = vld [vmem:[%s4161_s6 + $0x80] sm:$0xff] }
 0x1dd   :  { %v2761_v60 = vpack.c.bf16 %v1102_v51, %v1094_v50  ;;  %v423_v62 = vld [vmem:[%s4161_s6 + $0xc0] sm:$0xff]  ;;  %v1121_v51 = vld [vmem:[%s4161_s6 + $0x2e8] sm:$0xff] }
 0x1de   :  { %v262_v10 = vadd.f32 80.0, %v259_v8  ;;  %v257_v11 = vmul.f32 0.4342945, %v253_v9  ;;  %v449_v8 = vld [vmem:[%s4161_s6 + $0x190] sm:$0xff]  ;;  %v1104_v50 = vld [vmem:[%s4161_s6 + $0x260] sm:$0xff] }
 0x1df   :  { %v2970_v12 = vpop.eup %2969 }
 0x1e0   :  { %v266_v13 = vmul.f32 0.0125, %v262_v10  ;;  %v260_v14 = vmul.f32 10.0, %v257_v11  ;;  %v255_v15 = vmul.f32 0.6931472, %v2970_v12  ;;  %v457_v10 = vld [vmem:[%s4161_s6 + $0x1d0] sm:$0xff] }
 0x1e1   :  { %v417_v11 = vld [vmem:[%s4161_s6 + $0x90] sm:$0xff] }
 0x1e2   :  { %v263_v16 = vadd.f32 80.0, %v260_v14  ;;  %v258_v17 = vmul.f32 0.4342945, %v255_v15  ;;  %v269_v18 = vand.u32 2147483647, %v266_v13  ;;  %v425_v12 = vld [vmem:[%s4161_s6 + $0xd0] sm:$0xff]  ;;  %v2699_v14 = vpack.c.bf16 %v458_v1, %v450_v0 }
 0x1e3   :  { %v2731_v15 = vpack.c.bf16 %v426_v4, %v418_v2  ;;  %v1110_v0 = vld [vmem:[%s4161_s6 + $0x290] sm:$0xff]  ;;  %v2763_v4 = vpack.c.bf16 %v1119_v57, %v1111_v56  ;;  %v1677_v56 = vld [vmem:[%s4162_s7 + $0x180] sm:$0xff]  ;;  %v1678_v57 = vld [vmem:[%s4162_s7 + $0x188] sm:$0xff] }
 0x1e4   :  { %v267_v19 = vmul.f32 0.0125, %v263_v16  ;;  %v261_v20 = vmul.f32 10.0, %v258_v17  ;;  %v272_v24 = vmul.f32 %v269_v18, %v269_v18  ;;  %v436_v16 = vld [vmem:[%s4161_s6 + $0x128] sm:$0xff]  ;;  %v406_v18 = vld [vmem:[%s4161_s6 + $0x38] sm:$0xff]  ;;  %v1118_v1 = vld [vmem:[%s4161_s6 + $0x2d0] sm:$0xff] }
 0x1e5   :  { %v444_v17 = vld [vmem:[%s4161_s6 + $0x168] sm:$0xff] }
 0x1e6   :  { %v270_v21 = vand.u32 2147483647, %v267_v19  ;;  %v264_v22 = vadd.f32 80.0, %v261_v20  ;;  %v414_v19 = vld [vmem:[%s4161_s6 + $0x78] sm:$0xff]  ;;  %v2701_v20 = vpack.c.bf16 %v457_v10, %v449_v8 }
 0x1e7   :  { %v2743_v28 = vpack.c.bf16 %v414_v19, %v406_v18  ;;  %v1099_v8 = vld [vmem:[%s4161_s6 + $0x238] sm:$0xff]  ;;  %v420_v19 = vld [vmem:[%s4161_s6 + $0xa8] sm:$0xff] }
 0x1e8   :  { %v268_v23 = vmul.f32 0.0125, %v264_v22  ;;  %v273_v25 = vmul.f32 %v270_v21, %v270_v21  ;;  %v2733_v21 = vpack.c.bf16 %v425_v12, %v417_v11  ;;  %v435_v22 = vld [vmem:[%s4161_s6 + $0x120] sm:$0xff]  ;;  %v1107_v10 = vld [vmem:[%s4161_s6 + $0x278] sm:$0xff]  ;;  %v2725_v11 = vpack.c.bf16 %v423_v62, %v415_v61 }
 0x1e9   :  { %v2765_v12 = vpack.c.bf16 %v1118_v1, %v1110_v0  ;;  %v2775_v18 = vpack.c.bf16 %v1107_v10, %v1099_v8  ;;  %v1680_v62 = vld [vmem:[%s4162_s7 + $0x198] sm:$0xff]  ;;  %v1663_v1 = vld [vmem:[%s4162_s7 + $0x110] sm:$0xff]  ;;  %v1665_v10 = vld [vmem:[%s4162_s7 + $0x120] sm:$0xff] }
 0x1ea   :  { %v271_v26 = vand.u32 2147483647, %v268_v23  ;;  %v2683_v27 = vpack.c.bf16 %v273_v25, %v272_v24  ;;  %v443_v23 = vld [vmem:[%s4161_s6 + $0x160] sm:$0xff]  ;;  %v405_v24 = vld [vmem:[%s4161_s6 + $0x30] sm:$0xff] }
 0x1eb   :  { %v413_v25 = vld [vmem:[%s4161_s6 + $0x70] sm:$0xff] }
 0x1ec   :  { %v274_v30 = vmul.f32 %v271_v26, %v271_v26  ;;  %2684 = vmatprep.subr.bf16.mxu0 %v2683_v27 }
 0x1ed   :  { %2686 = vmatpush3.bf16.msra.mxu0 %v2683_v27  ;;  %v2703_v27 = vpack.c.bf16 %v444_v17, %v436_v16  ;;  %v1106_v16 = vld [vmem:[%s4161_s6 + $0x270] sm:$0xff] }
 0x1ee   :  { %2610 = vmatprep.subr.msk.mxu0 %vm300_vm3, %v274_v30 }
 0x1f1   :  { %2611 = vmatpush3.msk.msra.mxu0 %vm300_vm3, %v274_v30 }
 0x1f2   :  { %2613 = vmatmul.mubr.msk.f32.vlgmr.msra.gmra.mrb[6].mxu0 %vm281_vm2, %v276_v34  ;;  %2688 = vmatprep.subr.bf16.mxu0 %v2687_v33  ;;  %v430_v33 = vld [vmem:[%s4161_s6 + $0xf8] sm:$0xff]  ;;  %v2705_v34 = vpack.c.bf16 %v443_v23, %v435_v22 }
 0x1f3   :  { %2615 = vmatprep.mubr.msk.f32.mxu0 %vm281_vm2, %v277_v36  ;;  %2690 = vmatpush1.bf16.msra.mxu0 %v2689_v35  ;;  %v2745_v35 = vpack.c.bf16 %v413_v25, %v405_v24  ;;  %v451_v36 = vld [vmem:[%s4161_s6 + $0x1a0] sm:$0xff]  ;;  %v2747_v41 = vpack.c.bf16 %v430_v33, %v422_v32  ;;  %v1123_v22 = vld [vmem:[%s4161_s6 + $0x2f8] sm:$0xff]  ;;  %v1093_v32 = vld [vmem:[%s4161_s6 + $0x208] sm:$0xff] }
 0x1f4   :  { %2692 = vmatprep.subr.bf16.mxu0 %v2691_v43  ;;  %v408_v43 = vld [vmem:[%s4161_s6 + $0x48] sm:$0xff]  ;;  %v427_v25 = vld [vmem:[%s4161_s6 + $0xe0] sm:$0xff] }
 0x1f5   :  { %v2719_v52 = vpack.c.bf16 %v408_v43, %v400_v42  ;;  %v1101_v33 = vld [vmem:[%s4161_s6 + $0x248] sm:$0xff]  ;;  %v1108_v43 = vld [vmem:[%s4161_s6 + $0x280] sm:$0xff] }
 0x1f6   :  { %2616 = vmatmul.mubr.msk.f32.gmra.mrb[8].mxu0 %vm281_vm2, %v278_v37  ;;  %v459_v37 = vld [vmem:[%s4161_s6 + $0x1e0] sm:$0xff] }
 0x1f7   :  { %2618 = vmatprep.mubr.msk.f32.mxu0 %vm281_vm2, %v279_v38  ;;  %2694 = vmatpush1.bf16.msra.mxu0 %v2693_v48  ;;  %v421_v38 = vld [vmem:[%s4161_s6 + $0xb0] sm:$0xff]  ;;  %v2709_v46 = vpack.c.bf16 %v459_v37, %v451_v36  ;;  %v399_v48 = vld [vmem:[%s4161_s6] sm:$0xff] }
 0x1f8   :  { %2696 = vmatprep.subr.bf16.mxu0 %v2695_v55  ;;  %v424_v55 = vld [vmem:[%s4161_s6 + $0xc8] sm:$0xff]  ;;  %v2721_v58 = vpack.c.bf16 %v407_v49, %v399_v48  ;;  %v1092_v36 = vld [vmem:[%s4161_s6 + $0x200] sm:$0xff] }
 0x1f9   :  { %v2723_v2 = vpack.c.bf16 %v424_v55, %v416_v54  ;;  %v1100_v37 = vld [vmem:[%s4161_s6 + $0x240] sm:$0xff] }
 0x1fa   :  { %2619 = vmatmul.mubr.msk.f32.gmra.mrb[10].mxu0 %vm281_vm2, %v280_v39  ;;  %v429_v39 = vld [vmem:[%s4161_s6 + $0xf0] sm:$0xff]  ;;  %v1096_v49 = vld [vmem:[%s4161_s6 + $0x220] sm:$0xff] }
 0x1fb   :  { %534 = vmatprep.mubr.f32.mxu0 %v3090_v6  ;;  %v2749_v47 = vpack.c.bf16 %v429_v39, %v421_v38  ;;  %v2751_v38 = vpack.c.bf16 %v1101_v33, %v1093_v32  ;;  %v1109_v39 = vld [vmem:[%s4161_s6 + $0x288] sm:$0xff]  ;;  %v1112_v54 = vld [vmem:[%s4161_s6 + $0x2a0] sm:$0xff]  ;;  %v1647_v32 = vld [vmem:[%s4162_s7 + $0x90] sm:$0xff] }
 0x1fc   :  { %v1120_v55 = vld [vmem:[%s4161_s6 + $0x2e0] sm:$0xff]  ;;  %v1648_v33 = vld [vmem:[%s4162_s7 + $0x98] sm:$0xff] }
 0x2c5   :  { %v3344_v59 = vpop.f32.mrb[6].mxu0 }
 0x2c6   :  { %v3355_v63 = vpop.f32.mrb[7].mxu0 }
 0x2c9   :  { %v3372_v9 = vpop.f32.mrb[8].mxu0 }
 0x2ca   :  { %v3383_v13 = vpop.f32.mrb[9].mxu0 }
 0x2cb   :  { %2307 = vmatmul.mubr.msk.f32.vlgmr.msra.gmra.mrb[12].mxu0 %vm463_vm4, %v3383_v13  ;;  %2313 = vmatmul.mubr.msk.f32.vlgmr.msra.gmra.mrb[6].mxu1 %vm463_vm4, %v3383_v13 }
 0x2cc   :  { %2698 = vmatpush1.bf16.msra.mxu0 %v2697_v5  ;;  %2730 = vmatpush1.bf16.msra.mxu1 %v2729_v7  ;;  %v404_v5 = vld [vmem:[%s4161_s6 + $0x28] sm:$0xff] }
 0x2cd   :  { %540 = vmatprep.mubr.f32.mxu0 %v3090_v6  ;;  %771 = vmatprep.mubr.f32.mxu1 %v3090_v6  ;;  %v3415_v26 = vpop.f32.mrb[10].mxu0  ;;  %v412_v7 = vld [vmem:[%s4161_s6 + $0x68] sm:$0xff] }
 0x2ce   :  { %2700 = vmatprep.subr.bf16.mxu0 %v2699_v14  ;;  %2732 = vmatprep.subr.bf16.mxu1 %v2731_v15  ;;  %v3420_v30 = vpop.f32.mrb[11].mxu0  ;;  %v411_v14 = vld [vmem:[%s4161_s6 + $0x60] sm:$0xff]  ;;  %v1098_v15 = vld [vmem:[%s4161_s6 + $0x230] sm:$0xff]  ;;  %v2735_v17 = vpack.c.bf16 %v412_v7, %v404_v5  ;;  %v1682_v7 = vld [vmem:[%s4162_s7 + $0x1a8] sm:$0xff] }
 0x2cf   :  { %2308 = vmatmul.mubr.msk.f32.gmra.mrb[14].mxu0 %vm463_vm4, %v3372_v9  ;;  %2314 = vmatmul.mubr.msk.f32.gmra.mrb[8].mxu1 %vm463_vm4, %v3372_v9  ;;  %v2777_v24 = vpack.c.bf16 %v1106_v16, %v1098_v15  ;;  %v1681_v5 = vld [vmem:[%s4162_s7 + $0x1a0] sm:$0xff]  ;;  %v1667_v16 = vld [vmem:[%s4162_s7 + $0x130] sm:$0xff] }
 0x2d0   :  { %2702 = vmatpush1.bf16.msra.mxu0 %v2701_v20  ;;  %2734 = vmatpush1.bf16.msra.mxu1 %v2733_v21  ;;  %v428_v20 = vld [vmem:[%s4161_s6 + $0xe8] sm:$0xff]  ;;  %v1115_v21 = vld [vmem:[%s4161_s6 + $0x2b8] sm:$0xff]  ;;  %v2823_v8 = vpack.c.bf16 %v1682_v7, %v1681_v5  ;;  %v1637_v7 = vld [vmem:[%s4162_s7 + $0x40] sm:$0xff] }
 0x2d1   :  { %611 = vmatprep.mubr.f32.mxu0 %v3090_v6  ;;  %925 = vmatprep.mubr.f32.mxu1 %v3090_v6  ;;  %v2739_v29 = vpack.c.bf16 %v428_v20, %v420_v19  ;;  %v2779_v31 = vpack.c.bf16 %v1123_v22, %v1115_v21  ;;  %v1645_v19 = vld [vmem:[%s4162_s7 + $0x80] sm:$0xff]  ;;  %v1646_v20 = vld [vmem:[%s4162_s7 + $0x88] sm:$0xff] }
 0x2d2   :  { %2704 = vmatprep.subr.bf16.mxu0 %v2703_v27  ;;  %2744 = vmatprep.subr.bf16.mxu1 %v2743_v28  ;;  %v1114_v27 = vld [vmem:[%s4161_s6 + $0x2b0] sm:$0xff]  ;;  %v2783_v21 = vpack.c.bf16 %v1646_v20, %v1645_v19  ;;  %v1629_v22 = vld [vmem:[%s4162_s7] sm:$0xff] }
 0x2d3   :  { %2309 = vmatmul.mubr.msk.f32.vlgmr.msra.gmra.mrb[16].mxu0 %vm463_vm4, %v3383_v13  ;;  %2317 = vmatmul.mubr.msk.f32.vlgmr.msra.gmra.mrb[10].mxu1 %vm463_vm4, %v3355_v63  ;;  %v1122_v28 = vld [vmem:[%s4161_s6 + $0x2f0] sm:$0xff]  ;;  %v1657_v20 = vld [vmem:[%s4162_s7 + $0xe0] sm:$0xff] }
 0x2d4   :  { %2706 = vmatpush1.bf16.msra.mxu0 %v2705_v34  ;;  %2746 = vmatpush1.bf16.msra.mxu1 %v2745_v35  ;;  %v2781_v35 = vpack.c.bf16 %v1122_v28, %v1114_v27  ;;  %v1669_v28 = vld [vmem:[%s4162_s7 + $0x140] sm:$0xff] }
 0x2d5   :  { %617 = vmatprep.mubr.f32.mxu0 %v3090_v6  ;;  %931 = vmatprep.mubr.f32.mxu1 %v3090_v6 }
 0x2d6   :  { %2708 = vmatprep.subr.bf16.mxu0 %v2707_v40  ;;  %2748 = vmatprep.subr.bf16.mxu1 %v2747_v41  ;;  %v1117_v40 = vld [vmem:[%s4161_s6 + $0x2c8] sm:$0xff]  ;;  %v2753_v41 = vpack.c.bf16 %v1100_v37, %v1092_v36  ;;  %v1632_v36 = vld [vmem:[%s4162_s7 + $0x18] sm:$0xff] }
 0x2d7   :  { %2310 = vmatmul.mubr.msk.f32.gmra.mrb[18].mxu0 %vm463_vm4, %v3372_v9  ;;  %2318 = vmatmul.mubr.msk.f32.gmra.mrb[12].mxu1 %vm463_vm4, %v3344_v59  ;;  %v2755_v42 = vpack.c.bf16 %v1117_v40, %v1109_v39  ;;  %v1688_v39 = vld [vmem:[%s4162_s7 + $0x1d8] sm:$0xff] }
 0x2d8   :  { %2710 = vmatpush1.bf16.msra.mxu0 %v2709_v46  ;;  %2750 = vmatpush1.bf16.msra.mxu1 %v2749_v47  ;;  %v1105_v46 = vld [vmem:[%s4161_s6 + $0x268] sm:$0xff]  ;;  %v2757_v47 = vpack.c.bf16 %v1116_v44, %v1108_v43  ;;  %v1649_v44 = vld [vmem:[%s4162_s7 + $0xa0] sm:$0xff] }
 0x2d9   :  { %688 = vmatprep.mubr.f32.mxu0 %v3090_v6  ;;  %1079 = vmatprep.mubr.f32.mxu1 %v3090_v6  ;;  %v2767_v48 = vpack.c.bf16 %v1105_v46, %v1097_v45  ;;  %v1650_v45 = vld [vmem:[%s4162_s7 + $0xa8] sm:$0xff] }
 0x2da   :  { %2720 = vmatprep.subr.bf16.mxu0 %v2719_v52  ;;  %2760 = vmatprep.subr.bf16.mxu1 %v2759_v53  ;;  %v2769_v52 = vpack.c.bf16 %v1104_v50, %v1096_v49  ;;  %v2791_v46 = vpack.c.bf16 %v1650_v45, %v1649_v44  ;;  %v1689_v50 = vld [vmem:[%s4162_s7 + $0x1e0] sm:$0xff] }
 0x2db   :  { %2311 = vmatmul.mubr.msk.f32.vlgmr.msra.gmra.mrb[20].mxu0 %vm463_vm4, %v3383_v13  ;;  %2321 = vmatmul.mubr.msk.f32.vlgmr.msra.gmra.mrb[6].mxu1 %vm463_vm4, %v3355_v63  ;;  %v403_v13 = vld [vmem:[%s4161_s6 + $0x20] sm:$0xff] }
 0x2dc   :  { %2722 = vmatpush1.bf16.msra.mxu0 %v2721_v58  ;;  %2762 = vmatpush1.bf16.msra.mxu1 %v2761_v60  ;;  %v2737_v23 = vpack.c.bf16 %v411_v14, %v403_v13  ;;  %v2815_v58 = vpack.c.bf16 %v1678_v57, %v1677_v56  ;;  %v1661_v60 = vld [vmem:[%s4162_s7 + $0x100] sm:$0xff]  ;;  %v1683_v13 = vld [vmem:[%s4162_s7 + $0x1b0] sm:$0xff]  ;;  %v1684_v14 = vld [vmem:[%s4162_s7 + $0x1b8] sm:$0xff] }
 0x2dd   :  { %694 = vmatprep.mubr.f32.mxu0 %v3090_v6  ;;  %1085 = vmatprep.mubr.f32.mxu1 %v3090_v6  ;;  %v2827_v15 = vpack.c.bf16 %v1684_v14, %v1683_v13  ;;  %v1635_v57 = vld [vmem:[%s4162_s7 + $0x30] sm:$0xff] }
 0x2de   :  { %2724 = vmatprep.subr.bf16.mxu0 %v2723_v2  ;;  %2764 = vmatprep.subr.bf16.mxu1 %v2763_v4  ;;  %v1664_v2 = vld [vmem:[%s4162_s7 + $0x118] sm:$0xff]  ;;  %v1655_v14 = vld [vmem:[%s4162_s7 + $0xd0] sm:$0xff] }
 0x2df   :  { %2312 = vmatmul.mubr.msk.f32.gmra.mrb[22].mxu0 %vm463_vm4, %v3372_v9  ;;  %2322 = vmatmul.mubr.msk.f32.gmra.mrb[8].mxu1 %vm463_vm4, %v3344_v59  ;;  %v419_v9 = vld [vmem:[%s4161_s6 + $0xa0] sm:$0xff]  ;;  %v2821_v4 = vpack.c.bf16 %v1664_v2, %v1663_v1 }
 0x2e0   :  { %2726 = vmatpush1.bf16.msra.mxu0 %v2725_v11  ;;  %2766 = vmatpush1.bf16.msra.mxu1 %v2765_v12  ;;  %v2741_v34 = vpack.c.bf16 %v427_v25, %v419_v9  ;;  %v1666_v11 = vld [vmem:[%s4162_s7 + $0x128] sm:$0xff]  ;;  %v1685_v9 = vld [vmem:[%s4162_s7 + $0x1c0] sm:$0xff] }
 0x2e1   :  { %848 = vmatprep.mubr.f32.mxu0 %v3090_v6  ;;  %1271 = vmatprep.mubr.f32.mxu1 %v3090_v6  ;;  %v2825_v12 = vpack.c.bf16 %v1666_v11, %v1665_v10  ;;  %v1686_v25 = vld [vmem:[%s4162_s7 + $0x1c8] sm:$0xff]  ;;  %v1653_v2 = vld [vmem:[%s4162_s7 + $0xc0] sm:$0xff] }
 0x2e2   :  { %2736 = vmatprep.subr.bf16.mxu0 %v2735_v17  ;;  %2776 = vmatprep.subr.bf16.mxu1 %v2775_v18  ;;  %v1668_v17 = vld [vmem:[%s4162_s7 + $0x138] sm:$0xff]  ;;  %v2831_v27 = vpack.c.bf16 %v1686_v25, %v1685_v9  ;;  %v1741_v11 = vld [vmem:[%s4162_s7 + $0x380] sm:$0xff]  ;;  %v1659_v25 = vld [vmem:[%s4162_s7 + $0xf0] sm:$0xff] }
 0x2e3   :  { %2315 = vmatmul.mubr.msk.f32.vlgmr.msra.gmra.mrb[12].mxu0 %vm463_vm4, %v3355_v63  ;;  %2325 = vmatmul.mubr.msk.f32.vlgmr.msra.gmra.mrb[10].mxu1 %vm463_vm4, %v3420_v30  ;;  %v2829_v18 = vpack.c.bf16 %v1668_v17, %v1667_v16  ;;  %v1639_v17 = vld [vmem:[%s4162_s7 + $0x50] sm:$0xff] }
 0x2e4   :  { %2738 = vmatpush1.bf16.msra.mxu0 %v2737_v23  ;;  %2778 = vmatpush1.bf16.msra.mxu1 %v2777_v24  ;;  %v1630_v23 = vld [vmem:[%s4162_s7 + $0x8] sm:$0xff] }
 0x2e5   :  { %854 = vmatprep.mubr.f32.mxu0 %v3090_v6  ;;  %1277 = vmatprep.mubr.f32.mxu1 %v3090_v6  ;;  %v2785_v24 = vpack.c.bf16 %v1630_v23, %v1629_v22  ;;  %v1641_v23 = vld [vmem:[%s4162_s7 + $0x60] sm:$0xff] }
 0x2e6   :  { %2740 = vmatprep.subr.bf16.mxu0 %v2739_v29  ;;  %2780 = vmatprep.subr.bf16.mxu1 %v2779_v31  ;;  %v1670_v29 = vld [vmem:[%s4162_s7 + $0x148] sm:$0xff] }
 0x2e7   :  { %2316 = vmatmul.mubr.msk.f32.gmra.mrb[14].mxu0 %vm463_vm4, %v3344_v59  ;;  %2326 = vmatmul.mubr.msk.f32.gmra.mrb[12].mxu1 %vm463_vm4, %v3415_v26  ;;  %v2833_v31 = vpack.c.bf16 %v1670_v29, %v1669_v28  ;;  %v1643_v29 = vld [vmem:[%s4162_s7 + $0x70] sm:$0xff] }
 0x2e8   :  { %2742 = vmatpush1.bf16.msra.mxu0 %v2741_v34  ;;  %2782 = vmatpush1.bf16.msra.mxu1 %v2781_v35  ;;  %v2787_v34 = vpack.c.bf16 %v1648_v33, %v1647_v32  ;;  %v1631_v35 = vld [vmem:[%s4162_s7 + $0x10] sm:$0xff]  ;;  %v1709_v33 = vld [vmem:[%s4162_s7 + $0x280] sm:$0xff] }
 0x2e9   :  { %1002 = vmatprep.mubr.f32.mxu0 %v3090_v6  ;;  %1425 = vmatprep.mubr.f32.mxu1 %v3090_v6  ;;  %v2789_v37 = vpack.c.bf16 %v1632_v36, %v1631_v35 }
 0x2ea   :  { %2752 = vmatprep.subr.bf16.mxu0 %v2751_v38  ;;  %2816 = vmatprep.subr.bf16.mxu1 %v2815_v58  ;;  %v1687_v38 = vld [vmem:[%s4162_s7 + $0x1d0] sm:$0xff]  ;;  %v1636_v58 = vld [vmem:[%s4162_s7 + $0x38] sm:$0xff] }
 0x2eb   :  { %2319 = vmatmul.mubr.msk.f32.vlgmr.msra.gmra.mrb[20].mxu0 %vm463_vm4, %v3355_v63  ;;  %2329 = vmatmul.mubr.msk.f32.vlgmr.msra.gmra.mrb[6].mxu1 %vm463_vm4, %v3420_v30  ;;  %v1113_v63 = vld [vmem:[%s4161_s6 + $0x2a8] sm:$0xff]  ;;  %v2835_v40 = vpack.c.bf16 %v1688_v39, %v1687_v38  ;;  %v1459_v38 = vlaneseq }
 0x2ec   :  { %2754 = vmatpush1.bf16.msra.mxu0 %v2753_v41  ;;  %1008 = vmatprep.mubr.f32.mxu0 %v3090_v6  ;;  %v2771_v53 = vpack.c.bf16 %v1121_v51, %v1113_v63  ;;  %v1671_v41 = vld [vmem:[%s4162_s7 + $0x150] sm:$0xff]  ;;  %v1690_v63 = vld [vmem:[%s4162_s7 + $0x1e8] sm:$0xff] }
 0x2ed   :  { %1431 = vmatprep.mubr.f32.mxu1 %v3090_v6  ;;  %2756 = vmatprep.subr.bf16.mxu0 %v2755_v42  ;;  %v1672_v42 = vld [vmem:[%s4162_s7 + $0x158] sm:$0xff]  ;;  %v2839_v51 = vpack.c.bf16 %v1690_v63, %v1689_v50 }
 0x2ee   :  { %v2837_v43 = vpack.c.bf16 %v1672_v42, %v1671_v41  ;;  %v3856_v41 = vshrl.u32 %v1459_v38, 7  ;;  %v2331_v42 = vld [vmem:[%s4161_s6 + $0x300] ss:$8 sm:$0xf] }
 0x2ef   :  { %2320 = vmatmul.mubr.msk.f32.gmra.mrb[22].mxu0 %vm463_vm4, %v3344_v59  ;;  %2330 = vmatmul.mubr.msk.f32.gmra.mrb[8].mxu1 %vm463_vm4, %v3415_v26  ;;  %v2773_v59 = vpack.c.bf16 %v1120_v55, %v1112_v54  ;;  %v1651_v55 = vld [vmem:[%s4162_s7 + $0xb0] sm:$0xff] }
 0x2f0   :  { %2758 = vmatpush1.bf16.msra.mxu0 %v2757_v47  ;;  %1194 = vmatprep.mubr.f32.mxu0 %v3090_v6  ;;  %v1633_v47 = vld [vmem:[%s4162_s7 + $0x20] sm:$0xff]  ;;  %v1469_v45 = vsub.s32 2, %v3856_v41  ;;  %vm2246_vm10 = vcmp.eq.s32.totalorder %v3856_v41, 0  ;;  %vm2252_vm13 = vcmp.eq.s32.totalorder %v3856_v41, 1 }
 0x2f1   :  { %2768 = vmatprep.subr.bf16.mxu0 %v2767_v48  ;;  %v1634_v48 = vld [vmem:[%s4162_s7 + $0x28] sm:$0xff] }
 0x2f2   :  { %v2793_v49 = vpack.c.bf16 %v1634_v48, %v1633_v47 }
 0x2f3   :  { %2323 = vmatmul.mubr.msk.f32.vlgmr.msra.gmra.mrb[12].mxu0 %vm463_vm4, %v3420_v30 }
 0x2f4   :  { %2770 = vmatpush1.bf16.msra.mxu0 %v2769_v52  ;;  %1200 = vmatprep.mubr.f32.mxu0 %v3090_v6  ;;  %v1673_v52 = vld [vmem:[%s4162_s7 + $0x160] sm:$0xff] }
 0x2f5   :  { %2772 = vmatprep.subr.bf16.mxu0 %v2771_v53  ;;  %v1674_v53 = vld [vmem:[%s4162_s7 + $0x168] sm:$0xff] }
 0x2f6   :  { %v2841_v54 = vpack.c.bf16 %v1674_v53, %v1673_v52  ;;  %v1489_v52 = vsub.s32 7, %v3856_v41 }
 0x2f7   :  { %2324 = vmatmul.mubr.msk.f32.gmra.mrb[14].mxu0 %vm463_vm4, %v3415_v26 }
 0x2f8   :  { %2774 = vmatpush1.bf16.msra.mxu0 %v2773_v59  ;;  %1348 = vmatprep.mubr.f32.mxu0 %v3090_v6  ;;  %v1652_v59 = vld [vmem:[%s4162_s7 + $0xb8] sm:$0xff] }
 0x2f9   :  { %2784 = vmatprep.subr.bf16.mxu0 %v2783_v21  ;;  %v2795_v56 = vpack.c.bf16 %v1652_v59, %v1651_v55  ;;  %v1658_v21 = vld [vmem:[%s4162_s7 + $0xe8] sm:$0xff] }
 0x2fa   :  { %v2807_v22 = vpack.c.bf16 %v1658_v21, %v1657_v20 }
 0x2fb   :  { %2327 = vmatmul.mubr.msk.f32.vlgmr.msra.gmra.mrb[20].mxu0 %vm463_vm4, %v3420_v30  ;;  %v1662_v30 = vld [vmem:[%s4162_s7 + $0x108] sm:$0xff] }
 0x2fc   :  { %1354 = vmatprep.mubr.f32.mxu0 %v3090_v6  ;;  %v2817_v61 = vpack.c.bf16 %v1662_v30, %v1661_v60  ;;  %2786 = vmatpush3.bf16.msra.mxu0 %v2785_v24  ;;  %v2797_v60 = vpack.c.bf16 %v1636_v58, %v1635_v57  ;;  %v1691_v30 = vld [vmem:[%s4162_s7 + $0x1f0] sm:$0xff]  ;;  %v1642_v24 = vld [vmem:[%s4162_s7 + $0x68] sm:$0xff] }
 0x2fd   :  { %2788 = vmatprep.subr.bf16.mxu0 %v2787_v34  ;;  %v2809_v9 = vpack.c.bf16 %v1642_v24, %v1641_v23  ;;  %v1710_v34 = vld [vmem:[%s4162_s7 + $0x288] sm:$0xff]  ;;  %v1481_v23 = vsub.s32 5, %v3856_v41 }
 0x2fe   :  { %2818 = vmatpush3.bf16.msra.mxu1 %v2817_v61  ;;  %v1692_v61 = vld [vmem:[%s4162_s7 + $0x1f8] sm:$0xff]  ;;  %v2847_v35 = vpack.c.bf16 %v1710_v34, %v1709_v33 }
 0x2ff   :  { %2328 = vmatmul.mubr.msk.f32.gmra.mrb[22].mxu0 %vm463_vm4, %v3415_v26  ;;  %v1679_v26 = vld [vmem:[%s4162_s7 + $0x190] sm:$0xff] }
 0x300   :  { %v2819_v0 = vpack.c.bf16 %v1680_v62, %v1679_v26  ;;  %2790 = vmatpush3.bf16.msra.mxu0 %v2789_v37  ;;  %v2843_v26 = vpack.c.bf16 %v1692_v61, %v1691_v30  ;;  %v1675_v62 = vld [vmem:[%s4162_s7 + $0x170] sm:$0xff] }
 0x301   :  { %2792 = vmatprep.subr.bf16.mxu0 %v2791_v46  ;;  %v1473_v46 = vsub.s32 3, %v3856_v41 }
 0x302   :  { %2820 = vmatprep.subr.bf16.mxu1 %v2819_v0  ;;  %v1676_v0 = vld [vmem:[%s4162_s7 + $0x178] sm:$0xff] }
 0x303   :  { %2822 = vmatpush3.bf16.msra.mxu1 %v2821_v4  ;;  %v2845_v1 = vpack.c.bf16 %v1676_v0, %v1675_v62  ;;  %v1654_v4 = vld [vmem:[%s4162_s7 + $0xc8] sm:$0xff] }
 0x304   :  { %2824 = vmatprep.subr.bf16.mxu1 %v2823_v8  ;;  %2794 = vmatpush3.bf16.msra.mxu0 %v2793_v49  ;;  %v2799_v5 = vpack.c.bf16 %v1654_v4, %v1653_v2  ;;  %v1638_v8 = vld [vmem:[%s4162_s7 + $0x48] sm:$0xff] }
 0x305   :  { %2796 = vmatprep.subr.bf16.mxu0 %v2795_v56  ;;  %v2801_v10 = vpack.c.bf16 %v1638_v8, %v1637_v7 }
 0x307   :  { %2826 = vmatpush3.bf16.msra.mxu1 %v2825_v12  ;;  %v1742_v12 = vld [vmem:[%s4162_s7 + $0x388] sm:$0xff] }
 0x308   :  { %2828 = vmatprep.subr.bf16.mxu1 %v2827_v15  ;;  %2798 = vmatpush3.bf16.msra.mxu0 %v2797_v60  ;;  %v2879_v13 = vpack.c.bf16 %v1742_v12, %v1741_v11  ;;  %v1656_v15 = vld [vmem:[%s4162_s7 + $0xd8] sm:$0xff] }
 0x309   :  { %2800 = vmatprep.subr.bf16.mxu0 %v2799_v5  ;;  %v2803_v16 = vpack.c.bf16 %v1656_v15, %v1655_v14  ;;  %v1461_v5 = vsub.s32 0, %v3856_v41 }
 0x30b   :  { %2830 = vmatpush3.bf16.msra.mxu1 %v2829_v18  ;;  %v1640_v18 = vld [vmem:[%s4162_s7 + $0x58] sm:$0xff] }
 0x30c   :  { %2832 = vmatprep.subr.bf16.mxu1 %v2831_v27  ;;  %2802 = vmatpush3.bf16.msra.mxu0 %v2801_v10  ;;  %v2805_v19 = vpack.c.bf16 %v1640_v18, %v1639_v17  ;;  %v1660_v27 = vld [vmem:[%s4162_s7 + $0xf8] sm:$0xff]  ;;  %v1465_v10 = vsub.s32 1, %v3856_v41  ;;  %v1485_v17 = vsub.s32 6, %v3856_v41 }
 0x30d   :  { %2804 = vmatprep.subr.bf16.mxu0 %v2803_v16  ;;  %v2811_v28 = vpack.c.bf16 %v1660_v27, %v1659_v25  ;;  %v3882_v27 = vstv %s4155_s0 }
 0x30f   :  { %2834 = vmatpush3.bf16.msra.mxu1 %v2833_v31  ;;  %v1644_v31 = vld [vmem:[%s4162_s7 + $0x78] sm:$0xff] }
 0x310   :  { %2836 = vmatprep.subr.bf16.mxu1 %v2835_v40  ;;  %2806 = vmatpush3.bf16.msra.mxu0 %v2805_v19  ;;  %v2813_v32 = vpack.c.bf16 %v1644_v31, %v1643_v29 }
 0x311   :  { %2808 = vmatprep.subr.bf16.mxu0 %v2807_v22 }
 0x313   :  { %2838 = vmatpush3.bf16.msra.mxu1 %v2837_v43  ;;  %v2332_v43 = vld [vmem:[%s4161_s6 + $0x300] ss:$8 sm:$0xf0]  ;;  %s2336_s6 = sld [smem:[#allocation3 + $0x1]] }
 0x314   :  { %2840 = vmatprep.subr.bf16.mxu1 %v2839_v51  ;;  %2810 = vmatpush3.bf16.msra.mxu0 %v2809_v9  ;;  %v3864_v44 = vor.u32 %v2332_v43, %v2331_v42 }
 0x315   :  { %2812 = vmatprep.subr.bf16.mxu0 %v2811_v28 }
 0x316   :  { %v1470_v47 = vrot.slane %v3864_v44, %v1469_v45  ;;  %v1474_v49 = vrot.slane %v3864_v44, %v1473_v46  ;;  %v1490_v30 = vrot.slane %v3864_v44, %v1489_v52  ;;  %v1462_v16 = vrot.slane %v3864_v44, %v1461_v5 }
 0x317   :  { %2842 = vmatpush3.bf16.msra.mxu1 %v2841_v54  ;;  %v1466_v19 = vrot.slane %v3864_v44, %v1465_v10  ;;  %v1486_v24 = vrot.slane %v3864_v44, %v1485_v17 }
 0x318   :  { %2844 = vmatprep.subr.bf16.mxu1 %v2843_v26  ;;  %2814 = vmatpush3.bf16.msra.mxu0 %v2813_v32 }
 0x319   :  { %2848 = vmatprep.subr.bf16.mxu0 %v2847_v35 }
 0x31b   :  { %2846 = vmatpush3.bf16.msra.mxu1 %v2845_v1 }
 0x31c   :  { %2880 = vmatprep.subr.bf16.mxu1 %v2879_v13 }
 0x3a6   :  { %v613_v36 = vpop.f32.mrb[16].mxu0 }
 0x3a7   :  { %v615_v37 = vpop.f32.mrb[17].mxu0 }
 0x3aa   :  { %v619_v39 = vpop.f32.mrb[18].mxu0 }
 0x3ab   :  { %v621_v40 = vpop.f32.mrb[19].mxu0 }
 0x3b6   :  { %v1273_v48 = vpop.f32.mrb[10].mxu1 }
 0x3b7   :  { %v2926_v50 = vadd.f32 %v1273_v48, %v613_v36  ;;  %v1275_v63 = vpop.f32.mrb[11].mxu1 }
 0x3b8   :  { %v2927_v51 = vadd.f32 %v1275_v63, %v615_v37 }
 0x3b9   :  { %v1501_v53 = vadd.f32 %v2926_v50, %v1470_v47 }
 0x3ba   :  { %v1502_v54 = vadd.f32 %v2927_v51, %v1474_v49  ;;  %v1279_v55 = vpop.f32.mrb[12].mxu1 }
 0x3bb   :  { %v1517_v59 = vmax.f32 %v1501_v53, 0.0  ;;  %v2928_v56 = vadd.f32 %v1279_v55, %v619_v39  ;;  %v1281_v57 = vpop.f32.mrb[13].mxu1  ;;  %v3885_v39 = vrot.slane %v3864_v44, %v1481_v23  ;;  %v1743_v23 = vld [vmem:[%s4162_s7 + $0x390] sm:$0xff] }
 0x3bc   :  { %v1518_v58 = vmax.f32 %v1502_v54, 0.0  ;;  %v2929_v60 = vadd.f32 %v1281_v57, %v621_v40 }
 0x3bd   :  { %v1534_v61 = vmax.f32 %v1517_v59, 1e-06  ;;  %v1509_v26 = vadd.f32 %v2928_v56, %v1470_v47 }
 0x3be   :  { %v1535_v62 = vmax.f32 %v1518_v58, 1e-06  ;;  %v1510_v0 = vadd.f32 %v2929_v60, %v1474_v49  ;;  %v1427_v1 = vpop.f32.mrb[6].mxu1 }
 0x3bf   :  { %2971 = vlog2.f32 %v1534_v61  ;;  %v1525_v2 = vmax.f32 %v1509_v26, 0.0  ;;  %v1429_v4 = vpop.f32.mrb[7].mxu1  ;;  %v1505_v42 = vadd.f32 %v1486_v24, %v1427_v1 }
 0x3c0   :  { %2973 = vlog2.f32 %v1535_v62  ;;  %v1526_v7 = vmax.f32 %v1510_v0, 0.0  ;;  %v1506_v8 = vadd.f32 %v1490_v30, %v1429_v4 }
 0x3c1   :  { %v1542_v11 = vmax.f32 %v1525_v2, 1e-06  ;;  %v1521_v58 = vmax.f32 %v1505_v42, 0.0  ;;  %v1745_v42 = vld [vmem:[%s4162_s7 + $0x3a0] sm:$0xff] }
 0x3c2   :  { %v1543_v12 = vmax.f32 %v1526_v7, 1e-06  ;;  %v1522_v13 = vmax.f32 %v1506_v8, 0.0  ;;  %v1433_v14 = vpop.f32.mrb[8].mxu1 }
 0x3c3   :  { %2975 = vlog2.f32 %v1542_v11  ;;  %v1435_v15 = vpop.f32.mrb[9].mxu1  ;;  %v1513_v62 = vadd.f32 %v1486_v24, %v1433_v14  ;;  %v1538_v10 = vmax.f32 %v1521_v58, 1e-06  ;;  %v1477_v11 = vsub.s32 4, %v3856_v41  ;;  %v1744_v24 = vld [vmem:[%s4162_s7 + $0x398] sm:$0xff] }
 0x3c4   :  { %2977 = vlog2.f32 %v1543_v12  ;;  %v1539_v18 = vmax.f32 %v1522_v13, 1e-06  ;;  %v1514_v48 = vadd.f32 %v1490_v30, %v1435_v15  ;;  %v1748_v58 = vld [vmem:[%s4162_s7 + $0x3b8] sm:$0xff] }
 0x3c5   :  { %v1529_v15 = vmax.f32 %v1513_v62, 0.0 }
 0x3c6   :  { %2979 = vlog2.f32 %v1539_v18  ;;  %v1196_v20 = vpop.f32.mrb[12].mxu0  ;;  %v1530_v1 = vmax.f32 %v1514_v48, 0.0  ;;  %v1725_v18 = vld [vmem:[%s4162_s7 + $0x300] sm:$0xff] }
 0x3c7   :  { %v1499_v21 = vadd.f32 %v1462_v16, %v1196_v20  ;;  %v1198_v22 = vpop.f32.mrb[13].mxu0 }
 0x3c8   :  { %v1500_v9 = vadd.f32 %v1466_v19, %v1198_v22  ;;  %v1547_v14 = vmax.f32 %v1530_v1, 1e-06  ;;  %v1478_v22 = vrot.slane %v3864_v44, %v1477_v11  ;;  %v2883_v44 = vpack.c.bf16 %v1744_v24, %v1743_v23 }
 0x3c9   :  { %v2972_v25 = vpop.eup %2971  ;;  %v1515_v28 = vmax.f32 %v1499_v21, 0.0 }
 0x3ca   :  { %v2974_v29 = vpop.eup %2973  ;;  %v1553_v31 = vmul.f32 0.6931472, %v2972_v25  ;;  %v1516_v32 = vmax.f32 %v1500_v9, 0.0  ;;  %v1202_v33 = vpop.f32.mrb[14].mxu0  ;;  %v1546_v9 = vmax.f32 %v1529_v15, 1e-06 }
 0x3cb   :  { %v1555_v34 = vmul.f32 0.6931472, %v2974_v29  ;;  %v1532_v35 = vmax.f32 %v1515_v28, 1e-06  ;;  %v1507_v36 = vadd.f32 %v1462_v16, %v1202_v33  ;;  %v1204_v37 = vpop.f32.mrb[15].mxu0 }
 0x3cc   :  { %v1583_v40 = vmul.f32 %v3882_v27, %v1553_v31  ;;  %v1533_v43 = vmax.f32 %v1516_v32, 1e-06  ;;  %v1508_v45 = vadd.f32 %v1466_v19, %v1204_v37  ;;  %v1726_v19 = vld [vmem:[%s4162_s7 + $0x308] sm:$0xff] }
 0x3cd   :  { %v2976_v46 = vpop.eup %2975  ;;  %v1584_v47 = vmul.f32 %v3882_v27, %v1555_v34  ;;  %2981 = vlog2.f32 %v1532_v35  ;;  %v1523_v49 = vmax.f32 %v1507_v36, 0.0  ;;  %v2881_v31 = vpack.c.bf16 %v1726_v19, %v1725_v18  ;;  %v1727_v34 = vld [vmem:[%s4162_s7 + $0x310] sm:$0xff]  ;;  %v1728_v35 = vld [vmem:[%s4162_s7 + $0x318] sm:$0xff] }
 0x3ce   :  { %v2978_v50 = vpop.eup %2977  ;;  %v1601_v63 = vmul.f32 1.442695, %v1583_v40  ;;  %v1569_v51 = vmul.f32 0.6931472, %v2976_v46  ;;  %2983 = vlog2.f32 %v1533_v43  ;;  %v1524_v52 = vmax.f32 %v1508_v45, 0.0  ;;  %v1350_v53 = vpop.f32.mrb[20].mxu0 }
 0x3cf   :  { %v1603_v54 = vmul.f32 1.442695, %v1584_v47  ;;  %v1571_v55 = vmul.f32 0.6931472, %v2978_v50  ;;  %v1540_v59 = vmax.f32 %v1523_v49, 1e-06  ;;  %v1503_v40 = vadd.f32 %v1478_v22, %v1350_v53 }
 0x3d0   :  { %v2980_v56 = vpop.eup %2979  ;;  %2985 = vpow2.f32 %v1601_v63  ;;  %v1591_v57 = vmul.f32 %v3882_v27, %v1569_v51  ;;  %v1541_v60 = vmax.f32 %v1524_v52, 1e-06  ;;  %v1352_v61 = vpop.f32.mrb[21].mxu0  ;;  %v1746_v43 = vld [vmem:[%s4162_s7 + $0x3a8] sm:$0xff]  ;;  %v2885_v50 = vpack.c.bf16 %v1728_v35, %v1727_v34  ;;  %v1729_v53 = vld [vmem:[%s4162_s7 + $0x320] sm:$0xff] }
 0x3d1   :  { %2987 = vpow2.f32 %v1603_v54  ;;  %v1592_v30 = vmul.f32 %v3882_v27, %v1571_v55  ;;  %v1563_v26 = vmul.f32 0.6931472, %v2980_v56  ;;  %v1504_v2 = vadd.f32 %v3885_v39, %v1352_v61  ;;  %v1730_v54 = vld [vmem:[%s4162_s7 + $0x328] sm:$0xff] }
 0x3d2   :  { %v1617_v0 = vmul.f32 1.442695, %v1591_v57  ;;  %2989 = vlog2.f32 %v1540_v59  ;;  %v1356_v4 = vpop.f32.mrb[22].mxu0  ;;  %v2887_v52 = vpack.c.bf16 %v1746_v43, %v1745_v42  ;;  %v1519_v59 = vmax.f32 %v1503_v40, 0.0  ;;  %v1747_v57 = vld [vmem:[%s4162_s7 + $0x3b0] sm:$0xff]  ;;  %v1696_v43 = vld [vmem:[%s4162_s7 + $0x218] sm:$0xff] }
 0x3d3   :  { %v1619_v5 = vmul.f32 1.442695, %v1592_v30  ;;  %v1588_v7 = vmul.f32 %v3882_v27, %v1563_v26  ;;  %2991 = vlog2.f32 %v1541_v60  ;;  %v1358_v8 = vpop.f32.mrb[23].mxu0  ;;  %v1520_v12 = vmax.f32 %v1504_v2, 0.0  ;;  %v1695_v42 = vld [vmem:[%s4162_s7 + $0x210] sm:$0xff] }
 0x3d4   :  { %v1512_v48 = vadd.f32 %v3885_v39, %v1358_v8  ;;  %v1511_v56 = vadd.f32 %v1478_v22, %v1356_v4  ;;  %v2891_v2 = vpack.c.bf16 %v1748_v58, %v1747_v57  ;;  %v1731_v4 = vld [vmem:[%s4162_s7 + $0x330] sm:$0xff]  ;;  %v1698_v57 = vld [vmem:[%s4162_s7 + $0x228] sm:$0xff]  ;;  %v1737_v58 = vld [vmem:[%s4162_s7 + $0x360] sm:$0xff] }
 0x3d5   :  { %2993 = vpow2.f32 %v1619_v5  ;;  %v1611_v13 = vmul.f32 1.442695, %v1588_v7  ;;  %v1537_v16 = vmax.f32 %v1520_v12, 1e-06  ;;  %v1732_v5 = vld [vmem:[%s4162_s7 + $0x338] sm:$0xff]  ;;  %v1749_v7 = vld [vmem:[%s4162_s7 + $0x3c0] sm:$0xff] }
 0x3d6   :  { %2995 = vpow2.f32 %v1617_v0  ;;  %v1528_v30 = vmax.f32 %v1512_v48, 0.0  ;;  %v2889_v0 = vpack.c.bf16 %v1730_v54, %v1729_v53  ;;  %v1527_v12 = vmax.f32 %v1511_v56, 0.0  ;;  %v1736_v48 = vld [vmem:[%s4162_s7 + $0x358] sm:$0xff]  ;;  %v1697_v56 = vld [vmem:[%s4162_s7 + $0x220] sm:$0xff] }
 0x3d7   :  { %v2982_v17 = vpop.eup %2981  ;;  %2997 = vpow2.f32 %v1611_v13  ;;  %v1750_v13 = vld [vmem:[%s4162_s7 + $0x3c8] sm:$0xff]  ;;  %v2893_v19 = vpack.c.bf16 %v1732_v5, %v1731_v4  ;;  %v2857_v4 = vpack.c.bf16 %v1698_v57, %v1697_v56  ;;  %v1707_v56 = vld [vmem:[%s4162_s7 + $0x270] sm:$0xff]  ;;  %v1708_v57 = vld [vmem:[%s4162_s7 + $0x278] sm:$0xff] }
 0x3d8   :  { %v2984_v20 = vpop.eup %2983  ;;  %2999 = vlog2.f32 %v1538_v10  ;;  %v1549_v21 = vmul.f32 0.6931472, %v2982_v17  ;;  %v1536_v10 = vmax.f32 %v1519_v59, 1e-06  ;;  %v1545_v15 = vmax.f32 %v1528_v30, 1e-06 }
 0x3d9   :  { %v1551_v25 = vmul.f32 0.6931472, %v2984_v20  ;;  %3001 = vlog2.f32 %v1537_v16  ;;  %v1694_v16 = vld [vmem:[%s4162_s7 + $0x208] sm:$0xff]  ;;  %v1711_v20 = vld [vmem:[%s4162_s7 + $0x290] sm:$0xff]  ;;  %v2895_v24 = vpack.c.bf16 %v1750_v13, %v1749_v7 }
 0x3da   :  { %v2986_v28 = vpop.eup %2985  ;;  %3003 = vlog2.f32 %v1547_v14  ;;  %v1581_v29 = vmul.f32 %v3882_v27, %v1549_v21  ;;  %v1693_v14 = vld [vmem:[%s4162_s7 + $0x200] sm:$0xff]  ;;  %v1712_v21 = vld [vmem:[%s4162_s7 + $0x298] sm:$0xff]  ;;  %v1739_v13 = vld [vmem:[%s4162_s7 + $0x370] sm:$0xff] }
 0x3db   :  { %v2988_v32 = vpop.eup %2987  ;;  %v1582_v33 = vmul.f32 %v3882_v27, %v1551_v25  ;;  %3005 = vlog2.f32 %v1546_v9  ;;  %v1733_v9 = vld [vmem:[%s4162_s7 + $0x340] sm:$0xff]  ;;  %v1734_v25 = vld [vmem:[%s4162_s7 + $0x348] sm:$0xff]  ;;  %v2851_v34 = vpack.c.bf16 %v1712_v21, %v1711_v20 }
 0x3dc   :  { %v2990_v36 = vpop.eup %2989  ;;  %v1597_v37 = vmul.f32 1.442695, %v1581_v29  ;;  %1896 = vmatprep.mubr.f32.mxu1 %v2988_v32  ;;  %v1544_v29 = vmax.f32 %v1527_v12, 1e-06  ;;  %v1751_v32 = vld [vmem:[%s4162_s7 + $0x3d0] sm:$0xff]  ;;  %v2897_v40 = vpack.c.bf16 %v1734_v25, %v1733_v9  ;;  %v1700_v12 = vld [vmem:[%s4162_s7 + $0x238] sm:$0xff] }
 0x3dd   :  { %v2992_v45 = vpop.eup %2991  ;;  %v1599_v46 = vmul.f32 1.442695, %v1582_v33  ;;  %v1565_v47 = vmul.f32 0.6931472, %v2990_v36  ;;  %1897 = vmatmul.mubr.f32.vlgmr.msra.gmra.mrb[14].mxu1 %v2986_v28  ;;  %v1752_v33 = vld [vmem:[%s4162_s7 + $0x3d8] sm:$0xff]  ;;  %v1701_v25 = vld [vmem:[%s4162_s7 + $0x240] sm:$0xff] }
 0x3de   :  { %v1567_v49 = vmul.f32 0.6931472, %v2992_v45  ;;  %2882 = vmatpush3.bf16.msra.mxu1 %v2881_v31  ;;  %v2849_v31 = vpack.c.bf16 %v1694_v16, %v1693_v14  ;;  %v1735_v45 = vld [vmem:[%s4162_s7 + $0x350] sm:$0xff]  ;;  %v1740_v16 = vld [vmem:[%s4162_s7 + $0x378] sm:$0xff] }
 0x3df   :  { %v2994_v63 = vpop.eup %2993  ;;  %3007 = vpow2.f32 %v1599_v46  ;;  %v1589_v51 = vmul.f32 %v3882_v27, %v1565_v47  ;;  %2884 = vmatprep.subr.bf16.mxu1 %v2883_v44  ;;  %v2899_v47 = vpack.c.bf16 %v1752_v33, %v1751_v32 }
 0x3e0   :  { %v2996_v55 = vpop.eup %2995  ;;  %3009 = vpow2.f32 %v1597_v37  ;;  %v1590_v39 = vmul.f32 %v3882_v27, %v1567_v49  ;;  %1901 = vmatprep.mubr.f32.mxu1 %v2994_v63  ;;  %v1713_v49 = vld [vmem:[%s4162_s7 + $0x2a0] sm:$0xff] }
 0x3e1   :  { %v2998_v60 = vpop.eup %2997  ;;  %v1613_v61 = vmul.f32 1.442695, %v1589_v51  ;;  %1902 = vmatmul.mubr.f32.gmra.mrb[16].mxu1 %v2996_v55  ;;  %v1753_v63 = vld [vmem:[%s4162_s7 + $0x3e0] sm:$0xff]  ;;  %v1754_v51 = vld [vmem:[%s4162_s7 + $0x3e8] sm:$0xff] }
 0x3e2   :  { %v3000_v26 = vpop.eup %2999  ;;  %v1615_v62 = vmul.f32 1.442695, %v1590_v39  ;;  %2886 = vmatpush3.bf16.msra.mxu1 %v2885_v50  ;;  %2046 = vmatprep.mubr.f32.mxu1 %v2998_v60  ;;  %v1714_v50 = vld [vmem:[%s4162_s7 + $0x2a8] sm:$0xff]  ;;  %v2901_v39 = vpack.c.bf16 %v1736_v48, %v1735_v45  ;;  %v2903_v30 = vpack.c.bf16 %v1754_v51, %v1753_v63  ;;  %v1705_v63 = vld [vmem:[%s4162_s7 + $0x260] sm:$0xff] }
 0x3e3   :  { %v3002_v1 = vpop.eup %3001  ;;  %2888 = vmatprep.subr.bf16.mxu1 %v2887_v52  ;;  %v1561_v17 = vmul.f32 0.6931472, %v3000_v26  ;;  %v2853_v52 = vpack.c.bf16 %v1696_v43, %v1695_v42  ;;  %v2855_v59 = vpack.c.bf16 %v1714_v50, %v1713_v49  ;;  %v1738_v26 = vld [vmem:[%s4162_s7 + $0x368] sm:$0xff] }
 0x3e4   :  { %v3004_v8 = vpop.eup %3003  ;;  %3011 = vpow2.f32 %v1615_v62  ;;  %v1559_v11 = vmul.f32 0.6931472, %v3002_v1  ;;  %v1715_v62 = vld [vmem:[%s4162_s7 + $0x2b0] sm:$0xff]  ;;  %v1722_v42 = vld [vmem:[%s4162_s7 + $0x2e8] sm:$0xff] }
 0x3e5   :  { %3013 = vpow2.f32 %v1613_v61  ;;  %v3006_v22 = vpop.eup %3005  ;;  %v1579_v23 = vmul.f32 0.6931472, %v3004_v8  ;;  %v1587_v36 = vmul.f32 %v3882_v27, %v1561_v17  ;;  %v1755_v1 = vld [vmem:[%s4162_s7 + $0x3f0] sm:$0xff]  ;;  %v2905_v8 = vpack.c.bf16 %v1738_v26, %v1737_v58  ;;  %v1717_v17 = vld [vmem:[%s4162_s7 + $0x2c0] sm:$0xff]  ;;  %v1706_v51 = vld [vmem:[%s4162_s7 + $0x268] sm:$0xff] }
 0x3e6   :  { %v1586_v18 = vmul.f32 %v3882_v27, %v1559_v11  ;;  %2890 = vmatpush3.bf16.msra.mxu1 %v2889_v0  ;;  %3015 = vlog2.f32 %v1536_v10  ;;  %v1577_v37 = vmul.f32 0.6931472, %v3006_v22  ;;  %v1716_v0 = vld [vmem:[%s4162_s7 + $0x2b8] sm:$0xff]  ;;  %v1699_v11 = vld [vmem:[%s4162_s7 + $0x230] sm:$0xff]  ;;  %v2877_v58 = vpack.c.bf16 %v1708_v57, %v1707_v56 }
 0x3e7   :  { %2892 = vmatprep.subr.bf16.mxu1 %v2891_v2  ;;  %3017 = vlog2.f32 %v1545_v15  ;;  %v1596_v46 = vmul.f32 %v3882_v27, %v1579_v23  ;;  %v1609_v54 = vmul.f32 1.442695, %v1587_v36  ;;  %v1756_v2 = vld [vmem:[%s4162_s7 + $0x3f8] sm:$0xff]  ;;  %v2859_v10 = vpack.c.bf16 %v1716_v0, %v1715_v62  ;;  %v1703_v36 = vld [vmem:[%s4162_s7 + $0x250] sm:$0xff] }
 0x3e8   :  { %v1607_v28 = vmul.f32 1.442695, %v1586_v18  ;;  %v1595_v55 = vmul.f32 %v3882_v27, %v1577_v37  ;;  %v2907_v14 = vpack.c.bf16 %v1756_v2, %v1755_v1  ;;  %v1718_v18 = vld [vmem:[%s4162_s7 + $0x2c8] sm:$0xff]  ;;  %v2861_v21 = vpack.c.bf16 %v1700_v12, %v1699_v11  ;;  %v1704_v37 = vld [vmem:[%s4162_s7 + $0x258] sm:$0xff] }
 0x3e9   :  { %v3008_v44 = vpop.eup %3007  ;;  %v1627_v61 = vmul.f32 1.442695, %v1596_v46  ;;  %v2863_v9 = vpack.c.bf16 %v1718_v18, %v1717_v17  ;;  %v2869_v48 = vpack.c.bf16 %v1704_v37, %v1703_v36 }
 0x3ea   :  { %v3010_v35 = vpop.eup %3009  ;;  %3019 = vpow2.f32 %v1607_v28  ;;  %2894 = vmatpush3.bf16.msra.mxu1 %v2893_v19  ;;  %1821 = vmatprep.mubr.f32.mxu0 %v3008_v44  ;;  %v1625_v7 = vmul.f32 1.442695, %v1595_v55  ;;  %v1702_v28 = vld [vmem:[%s4162_s7 + $0x248] sm:$0xff] }
 0x3eb   :  { %1822 = vmatmul.mubr.f32.vlgmr.msra.gmra.mrb[24].mxu0 %v3010_v35  ;;  %2896 = vmatprep.subr.bf16.mxu1 %v2895_v24  ;;  %3021 = vlog2.f32 %v1544_v29  ;;  %v2909_v24 = vpack.c.bf16 %v1740_v16, %v1739_v13  ;;  %v1719_v29 = vld [vmem:[%s4162_s7 + $0x2d0] sm:$0xff]  ;;  %v2865_v44 = vpack.c.bf16 %v1702_v28, %v1701_v25  ;;  %v4095_v28 = vand.u32 127, %v1459_v38  ;;  %v2148_v38 = vld [vmem:[%s4163_s8] sm:$0xff] }
 0x3ec   :  { %2850 = vmatpush3.bf16.msra.mxu0 %v2849_v31  ;;  %3023 = vpow2.f32 %v1609_v54  ;;  %v1720_v31 = vld [vmem:[%s4162_s7 + $0x2d8] sm:$0xff] }
 0x3ed   :  { %2852 = vmatprep.subr.bf16.mxu0 %v2851_v34  ;;  %3025 = vpow2.f32 %v1627_v61  ;;  %v2867_v35 = vpack.c.bf16 %v1720_v31, %v1719_v29  ;;  %v2061_v29 = vmul.u32 5, %v3856_v41 }
 0x3ee   :  { %v3012_v53 = vpop.eup %3011  ;;  %2898 = vmatpush3.bf16.msra.mxu1 %v2897_v40  ;;  %3027 = vpow2.f32 %v1625_v7  ;;  %v1721_v40 = vld [vmem:[%s4162_s7 + $0x2e0] sm:$0xff] }
 0x3ef   :  { %v3014_v60 = vpop.eup %3013  ;;  %1826 = vmatprep.mubr.f32.mxu0 %v3012_v53  ;;  %2900 = vmatprep.subr.bf16.mxu1 %v2899_v47  ;;  %v2871_v50 = vpack.c.bf16 %v1722_v42, %v1721_v40  ;;  %v1724_v53 = vld [vmem:[%s4162_s7 + $0x2f8] sm:$0xff]  ;;  %vm2062_vm5 = vcmp.ge.s32.totalorder %v4095_v28, %v2061_v29  ;;  %v2149_v40 = vld [vmem:[%s4163_s8 + $0x8] sm:$0xff] }
 0x3f0   :  { %1827 = vmatmul.mubr.f32.gmra.mrb[26].mxu0 %v3014_v60  ;;  %v3016_v5 = vpop.eup %3015  ;;  %v2915_v42 = vpack.c.bf16 %v2149_v40, %v2148_v38 }
 0x3f1   :  { %2854 = vmatpush3.bf16.msra.mxu0 %v2853_v52  ;;  %v3018_v15 = vpop.eup %3017  ;;  %v1557_v20 = vmul.f32 0.6931472, %v3016_v5  ;;  %v1723_v52 = vld [vmem:[%s4162_s7 + $0x2f0] sm:$0xff] }
 0x3f2   :  { %2902 = vmatpush3.bf16.msra.mxu1 %v2901_v39  ;;  %2856 = vmatprep.subr.bf16.mxu0 %v2855_v59  ;;  %v1575_v23 = vmul.f32 0.6931472, %v3018_v15  ;;  %v2873_v39 = vpack.c.bf16 %v1706_v51, %v1705_v63  ;;  %v2875_v59 = vpack.c.bf16 %v1724_v53, %v1723_v52  ;;  %v2155_v63 = vld [vmem:[%s4163_s8 + $0x38] sm:$0xff] }
 0x3f3   :  { %2904 = vmatprep.subr.bf16.mxu1 %v2903_v30  ;;  %v1585_v32 = vmul.f32 %v3882_v27, %v1557_v20 }
 0x3f4   :  { %v3020_v19 = vpop.eup %3019  ;;  %v1594_v34 = vmul.f32 %v3882_v27, %v1575_v23 }
 0x3f5   :  { %1971 = vmatprep.mubr.f32.mxu0 %v3020_v19  ;;  %2858 = vmatpush3.bf16.msra.mxu0 %v2857_v4  ;;  %v3022_v22 = vpop.eup %3021  ;;  %v1605_v46 = vmul.f32 1.442695, %v1585_v32 }
 0x3f6   :  { %2906 = vmatpush3.bf16.msra.mxu1 %v2905_v8  ;;  %2860 = vmatprep.subr.bf16.mxu0 %v2859_v10  ;;  %v1573_v33 = vmul.f32 0.6931472, %v3022_v22  ;;  %v3024_v43 = vpop.eup %3023  ;;  %v1623_v49 = vmul.f32 1.442695, %v1594_v34  ;;  %v2063_v22 = vadd.s32 1, %v3856_v41 }
 0x3f7   :  { %2908 = vmatprep.subr.bf16.mxu1 %v2907_v14  ;;  %v3026_v45 = vpop.eup %3025  ;;  %3029 = vpow2.f32 %v1605_v46 }
 0x3f8   :  { %v1593_v47 = vmul.f32 %v3882_v27, %v1573_v33  ;;  %v3028_v54 = vpop.eup %3027  ;;  %3031 = vpow2.f32 %v1623_v49  ;;  %v2064_v31 = vmul.u32 5, %v2063_v22 }
 0x3f9   :  { %2862 = vmatpush3.bf16.msra.mxu0 %v2861_v21 }
 0x3fa   :  { %2910 = vmatpush3.bf16.msra.mxu1 %v2909_v24  ;;  %2864 = vmatprep.subr.bf16.mxu0 %v2863_v9  ;;  %v1621_v55 = vmul.f32 1.442695, %v1593_v47  ;;  %vm2065_vm6 = vcmp.lt.s32.totalorder %v4095_v28, %v2064_v31  ;;  %v2152_v47 = vld [vmem:[%s4163_s8 + $0x20] sm:$0xff] }
 0x3fb   :  { %2914 = vmatprep.subr.bf16.mxu1 %v3088_v3  ;;  %vm2066_vm7 = vmand %vm2062_vm5, %vm2065_vm6 }
 0x3fc   :  { %3033 = vpow2.f32 %v1621_v55  ;;  %v2067_v37 = vsel %vm2066_vm7, 0.0125, %v3090_v6 }
 0x3fd   :  { %2866 = vmatpush3.bf16.msra.mxu0 %v2865_v44  ;;  %2047 = vmatmul.mubr.f32.vlgmr.msra.gmra.mrb[18].mxu1 %v3024_v43  ;;  %v2150_v43 = vld [vmem:[%s4163_s8 + $0x10] sm:$0xff]  ;;  %3035 = vrcp.f32 %v3882_v27 }
 0x3fe   :  { %2051 = vmatprep.mubr.f32.mxu1 %v3026_v45  ;;  %2868 = vmatprep.subr.bf16.mxu0 %v2867_v35  ;;  %v2151_v45 = vld [vmem:[%s4163_s8 + $0x18] sm:$0xff] }
 0x3ff   :  { %2916 = vmatpush3.bf16.msra.mxu1 %v2915_v42  ;;  %v2918_v46 = vpack.c.bf16 %v2151_v45, %v2150_v43 }
 0x400   :  { %2917 = vmatprep.subr.bf16.mxu1 %v3088_v3 }
 0x401   :  { %2870 = vmatpush3.bf16.msra.mxu0 %v2869_v48  ;;  %2052 = vmatmul.mubr.f32.gmra.mrb[20].mxu1 %v3028_v54  ;;  %v3030_v60 = vpop.eup %3029  ;;  %v2153_v48 = vld [vmem:[%s4163_s8 + $0x28] sm:$0xff] }
 0x402   :  { %2872 = vmatprep.subr.bf16.mxu0 %v2871_v50  ;;  %2644 = vmatprep.mubr.msk.f32.mxu1 %vm3089_vm0, %v3090_v6  ;;  %v3032_v61 = vpop.eup %3031  ;;  %v2921_v49 = vpack.c.bf16 %v2153_v48, %v2152_v47  ;;  %v2154_v50 = vld [vmem:[%s4163_s8 + $0x30] sm:$0xff] }
 0x403   :  { %2919 = vmatpush3.bf16.msra.mxu1 %v2918_v46  ;;  %v2924_v51 = vpack.c.bf16 %v2155_v63, %v2154_v50 }
 0x404   :  { %2920 = vmatprep.subr.bf16.mxu1 %v3088_v3 }
 0x405   :  { %2874 = vmatpush3.bf16.msra.mxu0 %v2873_v39 }
 0x406   :  { %2876 = vmatprep.subr.bf16.mxu0 %v2875_v59  ;;  %v3034_v30 = vpop.eup %3033 }
 0x407   :  { %2922 = vmatpush3.bf16.msra.mxu1 %v2921_v49  ;;  %v3036_v54 = vpop.eup %3035 }
 0x408   :  { %2923 = vmatprep.subr.bf16.mxu1 %v3088_v3 }
 0x409   :  { %2878 = vmatpush3.bf16.msra.mxu0 %v2877_v58  ;;  %v2334_v58 = vld [vmem:[%s4163_s8 + $0x40] ss:$0 sm:$0xff]  ;;  %s3091_s8 = smov [#allocation6]  }
 0x40a   :  { %2911 = vmatprep.subr.bf16.mxu0 %v3088_v3  ;;  %s2285_s26 = sshll.u32 %s3091_s8, 4  ;;  %s2286_s26 = int_to_ptr.vmem [resolvable:$true] %s2285_s26 }
 0x40b   :  { %2925 = vmatpush3.bf16.msra.mxu1 %v2924_v51  ;;  %s3061_s0 = scalar_lea.vmem %s2286_s26, 96  ;;  %p3066_p6 = scmp.lt.s32.totalorder %s2286_s26, %s2286_s26 }
 0x40c   :  { %1972 = vmatmul.mubr.f32.vlgmr.msra.gmra.mrb[28].mxu0 %v3030_v60  ;;  %p3062_p5 = scmp.ne.s32.totalorder %s2286_s26, %s3061_s0  ;;  %p3067_p7 = scmp.lt.s32.totalorder %s3061_s0, %s3061_s0 }
 0x40d   :  { %1976 = vmatprep.mubr.f32.mxu0 %v3032_v61 }
 0x40e   :  { %p3068_p8 = por %p3067_p7, %p3066_p6 }
 0x410   :  { %1977 = vmatmul.mubr.f32.gmra.mrb[30].mxu0 %v3034_v30  ;;  %p3069_p9 = pnand %p3068_p8, %p3062_p5 }
 0x411   :  { %2625 = vmatprep.mubr.msk.f32.mxu0 %vm3089_vm0, %v3090_v6 }
 0x4b0   :  { %v2446_v26 = vpop.f32.mrb[14].mxu1 }
 0x4b1   :  { %v2447_v62 = vpop.f32.mrb[15].mxu1 }
 0x4b2   :  { %v2448_v0 = vadd.f32 %v2447_v62, %v2446_v26 }
 0x4b4   :  { %v2449_v1 = vpop.f32.mrb[16].mxu1 }
 0x4b5   :  { %v2450_v2 = vpop.f32.mrb[17].mxu1 }
 0x4b6   :  { %v2451_v4 = vadd.f32 %v2450_v2, %v2449_v1  ;;  %v2254_v1 = vstv %s2336_s6 }
 0x4b7   :  { %vm2255_vm14 = vcmp.eq.s32.totalorder %v4095_v28, %v2254_v1 }
 0x4b8   :  { %vm2256_vm15 = vmand %vm2252_vm13, %vm2255_vm14 }
 0x4be   :  { %v2408_v5 = vpop.f32.mrb[24].mxu0 }
 0x4bf   :  { %v2409_v7 = vpop.f32.mrb[25].mxu0 }
 0x4c0   :  { %v2410_v8 = vadd.f32 %v2409_v7, %v2408_v5 }
 0x4c2   :  { %v1899_v10 = vadd.f32 %v2448_v0, %v2410_v8  ;;  %v2248_v0 = vstv %s2247_s25 }
 0x4c3   :  { %v2411_v11 = vpop.f32.mrb[26].mxu0  ;;  %vm2249_vm11 = vcmp.eq.s32.totalorder %v4095_v28, %v2248_v0 }
 0x4c4   :  { %v2412_v12 = vpop.f32.mrb[27].mxu0  ;;  %vm2250_vm12 = vmand %vm2246_vm10, %vm2249_vm11 }
 0x4c5   :  { %v2413_v13 = vadd.f32 %v2412_v12, %v2411_v11  ;;  %v2251_v5 = vsel %vm2250_vm12, 1.0, %v3090_v6 }
 0x4c6   :  { %v2257_v8 = vsel %vm2256_vm15, 1.0, %v2251_v5 }
 0x4c7   :  { %v1904_v15 = vadd.f32 %v2451_v4, %v2413_v13 }
 0x4d0   :  { %v2522_v14 = vpop.f32.mrb[18].mxu1 }
 0x4d1   :  { %v2523_v16 = vpop.f32.mrb[19].mxu1 }
 0x4d2   :  { %v2524_v17 = vadd.f32 %v2523_v16, %v2522_v14 }
 0x4d4   :  { %v2525_v18 = vpop.f32.mrb[20].mxu1 }
 0x4d5   :  { %v2526_v19 = vpop.f32.mrb[21].mxu1 }
 0x4d6   :  { %v2527_v20 = vadd.f32 %v2526_v19, %v2525_v18 }
 0x4df   :  { %v2484_v21 = vpop.f32.mrb[28].mxu0 }
 0x4e0   :  { %v2485_v23 = vpop.f32.mrb[29].mxu0 }
 0x4e1   :  { %v2486_v24 = vadd.f32 %v2485_v23, %v2484_v21 }
 0x4e3   :  { %v1974_v9 = vadd.f32 %v2486_v24, %v1899_v10  ;;  %v2487_v25 = vpop.f32.mrb[30].mxu0 }
 0x4e4   :  { %v2488_v32 = vpop.f32.mrb[31].mxu0 }
 0x4e5   :  { %v2049_v33 = vadd.f32 %v2524_v17, %v1974_v9  ;;  %v2489_v44 = vadd.f32 %v2488_v32, %v2487_v25 }
 0x4e7   :  { %v1979_v34 = vadd.f32 %v2489_v44, %v1904_v15 }
 0x4e9   :  { %v2054_v35 = vadd.f32 %v2527_v20, %v1979_v34 }
 0x4eb   :  { %v2912_v36 = vpack.c.bf16 %v2054_v35, %v2049_v33 }
 0x4ed   :  { %2913 = vmatpush3.bf16.msra.mxu0 %v2912_v36 }
 0x4f0   :  { %2626 = vmatmul.mubr.msk.f32.vlgmr.msra.gmra.mrb[32].mxu0 %vm2068_vm8, %v2067_v37 }
 0x5c3   :  { %v2138_v52 = vpop.f32.mrb[32].mxu0 }
 0x5c4   :  { %3037 = vlog2.f32 %v2138_v52  ;;  %v2627_v53 = vpop.f32.mrb[33].mxu0 }
 0x5ce   :  { %v3038_v55 = vpop.eup %3037 }
 0x5cf   :  { %v2143_v39 = vmul.f32 0.6931472, %v3038_v55 }
 0x5d1   :  { %v2145_v59 = vmul.f32 %v3036_v54, %v2143_v39 }
 0x5d3   :  { %v2146_v56 = vmul.f32 1.442695, %v2145_v59 }
 0x5d5   :  { %3039 = vpow2.f32 %v2146_v56 }
 0x5df   :  { %v3040_v57 = vpop.eup %3039 }
 0x5e0   :  { %2645 = vmatmul.mubr.msk.f32.vlgmr.msra.gmra.mrb[22].mxu1 %vm58_vm1, %v3040_v57 }
 0x6b3   :  { %v2230_v3 = vpop.f32.mrb[22].mxu1 }
 0x6b4   :  { %v2231_v60 = vadd.f32 %v2334_v58, %v2230_v3  ;;  %v2646_v61 = vpop.f32.mrb[23].mxu1 }
 0x6b6   :  { %v2261_v27 = vand.u32 2147483647, %v2231_v60  ;;  %v2235_v30 = vsel %vm2234_vm9, %v2231_v60, -inf  ;;  %2275 = vst.msk [vmem:[#allocation6] sm:$0x3] %vm2234_vm9, %v2231_v60  ;;  %v2258_v11 = vmax.f32 %v2231_v60, 0.0  ;;  %v2259_v12 = vmul.f32 %v2257_v8, %v2231_v60 }
 0x6b7   :  { %2236 = vmax.xlane.f32.xlu0 %v2235_v30 }
 0x6b8   :  { %v2262_v26 = vsub.f32 0.0, %v2261_v27  ;;  %v2260_v17 = vsub.f32 %v2258_v11, %v2259_v12 }
 0x6ba   :  { %v2263_v62 = vmul.f32 1.442695, %v2262_v26 }
 0x6bc   :  { %3041 = vpow2.f32 %v2263_v62 }
 0x6c6   :  { %v3042_v2 = vpop.eup %3041 }
 0x6c7   :  { %v2265_v4 = vadd.f32 1.0, %v3042_v2  ;;  %v2268_v7 = vmul.f32 -0.5, %v3042_v2  ;;  %v2271_v13 = vand.u32 2147483647, %v3042_v2 }
 0x6c9   :  { %3043 = vlog2.f32 %v2265_v4  ;;  %v2269_v10 = vadd.f32 1.0, %v2268_v7  ;;  %vm2272_vm0 = vcmp.lt.f32.partialorder %v2271_v13, 0.0004427343 }
 0x6cb   :  { %v2270_v16 = vmul.f32 %v3042_v2, %v2269_v10 }
 0x6d3   :  { %v3044_v15 = vpop.eup %3043 }
 0x6d4   :  { %v2267_v14 = vmul.f32 0.6931472, %v3044_v15 }
 0x6d6   :  { %v2273_v18 = vsel %vm2272_vm0, %v2270_v16, %v2267_v14 }
 0x6d7   :  { %v2274_v19 = vadd.f32 %v2273_v18, %v2260_v17 }
 0x6d9   :  { %2279 = vst.msk [vmem:[#allocation6 + $0x4] sm:$0x3] %vm2234_vm9, %v2274_v19 }
 0x744   :  { %v2237_v41 = vpop.xlane.xlu0 %2236 }
 0x745   :  { %v2238_v20 = vsub.f32 %v2231_v60, %v2237_v41 }
 0x747   :  { %v2239_v21 = vmul.f32 1.442695, %v2238_v20 }
 0x749   :  { %3045 = vpow2.f32 %v2239_v21 }
 0x753   :  { %v3046_v6 = vpop.eup %3045 }
 0x754   :  { %v2241_v22 = vsel %vm2234_vm9, %v3046_v6, 0.0 }
 0x755   :  { %2242 = vadd.xlane.f32.xlu0 %v2241_v22 }
 0x7e2   :  { %v2243_v23 = vpop.xlane.xlu0 %2242 }
 0x7e3   :  { %3047 = vrcp.f32 %v2243_v23 }
 0x7ed   :  { %v3048_v24 = vpop.eup %3047 }
 0x7ee   :  { %v2245_v9 = vmul.f32 %v3048_v24, %v3046_v6 }
 0x7f0   :  { %2277 = vst.msk [vmem:[#allocation6 + $0x2] sm:$0x3] %vm2234_vm9, %v2245_v9 }
 0x7f1   :  { %3072 = shalt.err (!%p3069_p9)
}
 0x7f2   :  { %s3073_s29 = scalar_lea.hbm %s4164_s9, 96 }
 0x7f3   :  { %p3074_p10 = scmp.ne.s32.totalorder %s4164_s9, %s3073_s29  ;;  %p3077_p11 = scmp.lt.u32.totalorder %s3073_s29, %s4164_s9 }
 0x7f5   :  { %p3079_p12 = pnand %p3077_p11, %p3074_p10 }
 0x7f7   :  { %3082 = shalt.err (!%p3079_p12)
}
 0x7f8   :  { %s3092_s7 = smov 32   ;;  %s3093_s12 = smov 2  }
 0x7f9   :  { %2291 = dma.vmem_to_hbm [thread:$0]  %s2286_s26, 96, %s4164_s9, [#allocation4], %s3092_s7, %s3092_s7, %s3093_s12  }
 0x7fa   :  { %3085 = dma.done.wait [#allocation4], 96  }
 0x7fb   :  { %3086 = vsyncadd [#allocation4], 4294967200 }
 0x7fc   :  { %2295 = vsyncpa [#allocation4], 1 }
 0x7fd   :  { %2296 = vsyncpa [#allocation5], 1 }

</bundles_post_ra>
